<compile_context>
chip_gen: v5e
topology: v5e:2x2
jax: 0.10.0
libtpu: 0.0.40
codegen_flags: <defaults>
</compile_context>

<pallas_src>
import functools

import jax
import jax.numpy as jnp
from jax import lax
from jax.experimental import pallas as pl
from jax.experimental.pallas import tpu as pltpu

NEG_SLOPE = 0.01  # torch.nn.LeakyReLU default negative_slope


def _resb_kernel(x_ref, rc_ref, w1_ref, b1_ref, w2_ref, b2_ref, o_ref, *, H, W):
    # x_ref:  (C, N*H*W)  lane-dense activation slab (pixel index on lanes)
    # rc_ref: (2, N*H*W)  int32 per-pixel (row, col) indices within its image
    # w*_ref: (9, C, C)   3x3 taps flattened, each (C_out, C_in)
    # b*_ref: (C, 1)
    # o_ref:  (C, N*H*W)
    C, NHW = x_ref.shape
    x = x_ref[...].astype(jnp.float32)

    rows = rc_ref[pl.ds(0, 1), :]            # (1, NHW) row index within image
    cols = rc_ref[pl.ds(1, 1), :]            # (1, NHW) col index within image
    rm = {-1: (rows >= 1).astype(jnp.float32),
          0: None,
          1: (rows < H - 1).astype(jnp.float32)}
    cm = {-1: (cols >= 1).astype(jnp.float32),
          0: None,
          1: (cols < W - 1).astype(jnp.float32)}
    # Per-tap validity masks, computed once (VPU) and reused by both convs.
    tap_mask = []
    for k in range(9):
        dh, dw = k // 3 - 1, k % 3 - 1
        m = None
        if rm[dh] is not None:
            m = rm[dh]
        if cm[dw] is not None:
            m = cm[dw] if m is None else m * cm[dw]
        tap_mask.append(m)

    def conv3x3(inp, w_ref, b_ref):
        acc = jnp.zeros((C, NHW), jnp.float32)
        for k in range(9):
            dh, dw = k // 3 - 1, k % 3 - 1
            s = dh * W + dw                      # flat-index source offset
            # shifted[:, p] == inp[:, p + s]; out-of-image taps masked to zero.
            src = inp if s == 0 else pltpu.roll(inp, shift=(-s) % NHW, axis=1)
            if tap_mask[k] is not None:
                src = src * tap_mask[k]          # (1, NHW) mask broadcasts over C
            # (C_out, C_in) @ (C_in, N*H*W): lane axis carries the pixels.
            acc = acc + jnp.dot(w_ref[k], src,
                                preferred_element_type=jnp.float32)
        return acc + b_ref[...]                  # (C, 1) bias broadcasts over lanes

    y = conv3x3(x, w1_ref, b1_ref)
    y = jnp.where(y > 0, y, NEG_SLOPE * y)       # LeakyReLU
    y = conv3x3(y, w2_ref, b2_ref)
    o_ref[...] = (x + y).astype(o_ref.dtype)     # residual add, lane-dense store


@jax.jit
def res_block(x, w1, b1, w2, b2):
    """x: (N, C, H, W) NCHW.  w*: (C_out, C_in, 3, 3) OIHW (PyTorch).  b*: (C,)."""
    N, C, H, W = x.shape
    assert w1.shape == (C, C, 3, 3) and w2.shape == (C, C, 3, 3), (
        "ResB residual requires C_in == C_out")
    NHW = N * H * W

    # Lane-dense layout: channels on sublanes, flat pixel index on lanes.
    x_flat = jnp.transpose(x, (1, 0, 2, 3)).reshape(C, NHW)

    # 3x3 taps flattened to (9, C_out, C_in), k = 3*kh + kw.
    w1r = jnp.transpose(w1, (2, 3, 0, 1)).reshape(9, C, C).astype(jnp.float32)
    w2r = jnp.transpose(w2, (2, 3, 0, 1)).reshape(9, C, C).astype(jnp.float32)
    b1r = b1.reshape(C, 1).astype(jnp.float32)
    b2r = b2.reshape(C, 1).astype(jnp.float32)

    # Compact per-pixel (row, col) index table; the kernel derives the 8
    # border masks from it with a handful of VPU compares.
    rows = jnp.tile(jnp.repeat(jnp.arange(H, dtype=jnp.int32), W), N)   # (NHW,)
    cols = jnp.tile(jnp.arange(W, dtype=jnp.int32), N * H)              # (NHW,)
    rowcol = jnp.stack([rows, cols], axis=0)                            # (2, NHW)

    itemsize = x.dtype.itemsize
    flops = 2 * 2 * 9 * C * C * NHW                       # two 3x3 convs
    bytes_accessed = (2 * C * NHW * itemsize              # x in + out
                      + 2 * NHW * 4                       # row/col indices
                      + 2 * 9 * C * C * 4 + 2 * C * 4)    # weights + biases

    kernel = functools.partial(_resb_kernel, H=H, W=W)
    out_flat = pl.pallas_call(
        kernel,
        out_shape=jax.ShapeDtypeStruct((C, NHW), x.dtype),
        in_specs=[
            pl.BlockSpec((C, NHW), lambda: (0, 0)),
            pl.BlockSpec((2, NHW), lambda: (0, 0)),
            pl.BlockSpec((9, C, C), lambda: (0, 0, 0)),
            pl.BlockSpec((C, 1), lambda: (0, 0)),
            pl.BlockSpec((9, C, C), lambda: (0, 0, 0)),
            pl.BlockSpec((C, 1), lambda: (0, 0)),
        ],
        out_specs=pl.BlockSpec((C, NHW), lambda: (0, 0)),
        cost_estimate=pl.CostEstimate(flops=flops, transcendentals=0,
                                      bytes_accessed=bytes_accessed),
    )(x_flat, rowcol, w1r, b1r, w2r, b2r)

    return out_flat.reshape(C, N, H, W).transpose(1, 0, 2, 3)


def _reference(x, w1, b1, w2, b2):
    """Plain-JAX reference (NCHW / OIHW), matching PyTorch Conv2d semantics."""
    dn = ("NCHW", "OIHW", "NCHW")
    y = lax.conv_general_dilated(x, w1, (1, 1), "SAME", dimension_numbers=dn)
    y = y + b1.reshape(1, -1, 1, 1)
    y = jnp.where(y > 0, y, NEG_SLOPE * y)
    y = lax.conv_general_dilated(y, w2, (1, 1), "SAME", dimension_numbers=dn)
    y = y + b2.reshape(1, -1, 1, 1)
    return x + y


if __name__ == "__main__":
    # Small shapes consistent with ResB(in_channels=4, out_channels=4), NCHW.
    N, C, H, W = 2, 4, 16, 16
    key = jax.random.PRNGKey(0)
    kx, kw1, kb1, kw2, kb2 = jax.random.split(key, 5)

    x = jax.random.normal(kx, (N, C, H, W), dtype=jnp.float32)
    w1 = jax.random.normal(kw1, (C, C, 3, 3), dtype=jnp.float32) * 0.1
    b1 = jax.random.normal(kb1, (C,), dtype=jnp.float32) * 0.1
    w2 = jax.random.normal(kw2, (C, C, 3, 3), dtype=jnp.float32) * 0.1
    b2 = jax.random.normal(kb2, (C,), dtype=jnp.float32) * 0.1

    out = jax.block_until_ready(res_block(x, w1, b1, w2, b2))

    ref = _reference(x, w1, b1, w2, b2)
    assert out.shape == (N, C, H, W)
    max_err = float(jnp.max(jnp.abs(out - ref)))
    assert max_err < 1e-3, f"mismatch vs reference: max abs err {max_err}"

    print("KERNEL_OK")
</pallas_src>

<mosaic_0001>
module attributes {stable_mosaic.version = 11 : i64} {
  func.func @_resb_kernel(%arg0: memref<4x512xf32, #tpu.memory_space<vmem>>, %arg1: memref<2x512xi32, #tpu.memory_space<vmem>>, %arg2: memref<9x4x4xf32, #tpu.memory_space<vmem>>, %arg3: memref<4x1xf32, #tpu.memory_space<vmem>>, %arg4: memref<9x4x4xf32, #tpu.memory_space<vmem>>, %arg5: memref<4x1xf32, #tpu.memory_space<vmem>>, %arg6: memref<4x512xf32, #tpu.memory_space<vmem>>) attributes {dimension_semantics = [], scalar_prefetch = 0 : i64, scratch_operands = 0 : i64, tpu.core_type = #tpu.core_type<tc>} {
    %c0 = arith.constant 0 : index
    %c0_0 = arith.constant 0 : index
    %0 = vector.load %arg0[%c0, %c0_0] : memref<4x512xf32, #tpu.memory_space<vmem>>, vector<4x512xf32>
    %c0_1 = arith.constant 0 : index
    %c0_2 = arith.constant 0 : index
    %1 = vector.load %arg1[%c0_1, %c0_2] : memref<2x512xi32, #tpu.memory_space<vmem>>, vector<1x512xi32>
    %c1 = arith.constant 1 : index
    %c0_3 = arith.constant 0 : index
    %2 = vector.load %arg1[%c1, %c0_3] : memref<2x512xi32, #tpu.memory_space<vmem>>, vector<1x512xi32>
    %c1_i32 = arith.constant 1 : i32
    %3 = vector.broadcast %c1_i32 : i32 to vector<1x512xi32>
    %4 = arith.cmpi sge, %1, %3 : vector<1x512xi32>
    %5 = arith.extui %4 : vector<1x512xi1> to vector<1x512xi32>
    %6 = arith.sitofp %5 : vector<1x512xi32> to vector<1x512xf32>
    %c15_i32 = arith.constant 15 : i32
    %7 = vector.broadcast %c15_i32 : i32 to vector<1x512xi32>
    %8 = arith.cmpi slt, %1, %7 : vector<1x512xi32>
    %9 = arith.extui %8 : vector<1x512xi1> to vector<1x512xi32>
    %10 = arith.sitofp %9 : vector<1x512xi32> to vector<1x512xf32>
    %c1_i32_4 = arith.constant 1 : i32
    %11 = vector.broadcast %c1_i32_4 : i32 to vector<1x512xi32>
    %12 = arith.cmpi sge, %2, %11 : vector<1x512xi32>
    %13 = arith.extui %12 : vector<1x512xi1> to vector<1x512xi32>
    %14 = arith.sitofp %13 : vector<1x512xi32> to vector<1x512xf32>
    %c15_i32_5 = arith.constant 15 : i32
    %15 = vector.broadcast %c15_i32_5 : i32 to vector<1x512xi32>
    %16 = arith.cmpi slt, %2, %15 : vector<1x512xi32>
    %17 = arith.extui %16 : vector<1x512xi1> to vector<1x512xi32>
    %18 = arith.sitofp %17 : vector<1x512xi32> to vector<1x512xf32>
    %19 = arith.mulf %6, %14 : vector<1x512xf32>
    %20 = arith.mulf %6, %18 : vector<1x512xf32>
    %21 = arith.mulf %10, %14 : vector<1x512xf32>
    %22 = arith.mulf %10, %18 : vector<1x512xf32>
    %cst = arith.constant 0.000000e+00 : f32
    %23 = vector.broadcast %cst : f32 to vector<4x512xf32>
    %c17_i32 = arith.constant 17 : i32
    %24 = tpu.dynamic_rotate %0 by %c17_i32 dim 1 : vector<4x512xf32>, i32 -> vector<4x512xf32>
    %25 = vector.broadcast %19 : vector<1x512xf32> to vector<4x512xf32>
    %26 = arith.mulf %24, %25 : vector<4x512xf32>
    %c0_6 = arith.constant 0 : index
    %c0_7 = arith.constant 0 : index
    %c0_8 = arith.constant 0 : index
    %27 = vector.load %arg2[%c0_6, %c0_7, %c0_8] : memref<9x4x4xf32, #tpu.memory_space<vmem>>, vector<1x4x4xf32>
    %28 = vector.shape_cast %27 : vector<1x4x4xf32> to vector<4x4xf32>
    %cst_9 = arith.constant dense<0.000000e+00> : vector<4x512xf32>
    %29 = tpu.matmul %28, %26, %cst_9 {dimension_numbers = #tpu.dot_dimension_numbers<[1], [0], [0], [1], [0, 0, 1, 1], [], []>} : vector<4x4xf32>, vector<4x512xf32>, vector<4x512xf32> -> vector<4x512xf32>
    %30 = arith.addf %23, %29 : vector<4x512xf32>
    %c16_i32 = arith.constant 16 : i32
    %31 = tpu.dynamic_rotate %0 by %c16_i32 dim 1 : vector<4x512xf32>, i32 -> vector<4x512xf32>
    %32 = vector.broadcast %6 : vector<1x512xf32> to vector<4x512xf32>
    %33 = arith.mulf %31, %32 : vector<4x512xf32>
    %c1_10 = arith.constant 1 : index
    %c0_11 = arith.constant 0 : index
    %c0_12 = arith.constant 0 : index
    %34 = vector.load %arg2[%c1_10, %c0_11, %c0_12] : memref<9x4x4xf32, #tpu.memory_space<vmem>>, vector<1x4x4xf32>
    %35 = vector.shape_cast %34 : vector<1x4x4xf32> to vector<4x4xf32>
    %cst_13 = arith.constant dense<0.000000e+00> : vector<4x512xf32>
    %36 = tpu.matmul %35, %33, %cst_13 {dimension_numbers = #tpu.dot_dimension_numbers<[1], [0], [0], [1], [0, 0, 1, 1], [], []>} : vector<4x4xf32>, vector<4x512xf32>, vector<4x512xf32> -> vector<4x512xf32>
    %37 = arith.addf %30, %36 : vector<4x512xf32>
    %c15_i32_14 = arith.constant 15 : i32
    %38 = tpu.dynamic_rotate %0 by %c15_i32_14 dim 1 : vector<4x512xf32>, i32 -> vector<4x512xf32>
    %39 = vector.broadcast %20 : vector<1x512xf32> to vector<4x512xf32>
    %40 = arith.mulf %38, %39 : vector<4x512xf32>
    %c2 = arith.constant 2 : index
    %c0_15 = arith.constant 0 : index
    %c0_16 = arith.constant 0 : index
    %41 = vector.load %arg2[%c2, %c0_15, %c0_16] : memref<9x4x4xf32, #tpu.memory_space<vmem>>, vector<1x4x4xf32>
    %42 = vector.shape_cast %41 : vector<1x4x4xf32> to vector<4x4xf32>
    %cst_17 = arith.constant dense<0.000000e+00> : vector<4x512xf32>
    %43 = tpu.matmul %42, %40, %cst_17 {dimension_numbers = #tpu.dot_dimension_numbers<[1], [0], [0], [1], [0, 0, 1, 1], [], []>} : vector<4x4xf32>, vector<4x512xf32>, vector<4x512xf32> -> vector<4x512xf32>
    %44 = arith.addf %37, %43 : vector<4x512xf32>
    %c1_i32_18 = arith.constant 1 : i32
    %45 = tpu.dynamic_rotate %0 by %c1_i32_18 dim 1 : vector<4x512xf32>, i32 -> vector<4x512xf32>
    %46 = vector.broadcast %14 : vector<1x512xf32> to vector<4x512xf32>
    %47 = arith.mulf %45, %46 : vector<4x512xf32>
    %c3 = arith.constant 3 : index
    %c0_19 = arith.constant 0 : index
    %c0_20 = arith.constant 0 : index
    %48 = vector.load %arg2[%c3, %c0_19, %c0_20] : memref<9x4x4xf32, #tpu.memory_space<vmem>>, vector<1x4x4xf32>
    %49 = vector.shape_cast %48 : vector<1x4x4xf32> to vector<4x4xf32>
    %cst_21 = arith.constant dense<0.000000e+00> : vector<4x512xf32>
    %50 = tpu.matmul %49, %47, %cst_21 {dimension_numbers = #tpu.dot_dimension_numbers<[1], [0], [0], [1], [0, 0, 1, 1], [], []>} : vector<4x4xf32>, vector<4x512xf32>, vector<4x512xf32> -> vector<4x512xf32>
    %51 = arith.addf %44, %50 : vector<4x512xf32>
    %c4 = arith.constant 4 : index
    %c0_22 = arith.constant 0 : index
    %c0_23 = arith.constant 0 : index
    %52 = vector.load %arg2[%c4, %c0_22, %c0_23] : memref<9x4x4xf32, #tpu.memory_space<vmem>>, vector<1x4x4xf32>
    %53 = vector.shape_cast %52 : vector<1x4x4xf32> to vector<4x4xf32>
    %cst_24 = arith.constant dense<0.000000e+00> : vector<4x512xf32>
    %54 = tpu.matmul %53, %0, %cst_24 {dimension_numbers = #tpu.dot_dimension_numbers<[1], [0], [0], [1], [0, 0, 1, 1], [], []>} : vector<4x4xf32>, vector<4x512xf32>, vector<4x512xf32> -> vector<4x512xf32>
    %55 = arith.addf %51, %54 : vector<4x512xf32>
    %c511_i32 = arith.constant 511 : i32
    %56 = tpu.dynamic_rotate %0 by %c511_i32 dim 1 : vector<4x512xf32>, i32 -> vector<4x512xf32>
    %57 = vector.broadcast %18 : vector<1x512xf32> to vector<4x512xf32>
    %58 = arith.mulf %56, %57 : vector<4x512xf32>
    %c5 = arith.constant 5 : index
    %c0_25 = arith.constant 0 : index
    %c0_26 = arith.constant 0 : index
    %59 = vector.load %arg2[%c5, %c0_25, %c0_26] : memref<9x4x4xf32, #tpu.memory_space<vmem>>, vector<1x4x4xf32>
    %60 = vector.shape_cast %59 : vector<1x4x4xf32> to vector<4x4xf32>
    %cst_27 = arith.constant dense<0.000000e+00> : vector<4x512xf32>
    %61 = tpu.matmul %60, %58, %cst_27 {dimension_numbers = #tpu.dot_dimension_numbers<[1], [0], [0], [1], [0, 0, 1, 1], [], []>} : vector<4x4xf32>, vector<4x512xf32>, vector<4x512xf32> -> vector<4x512xf32>
    %62 = arith.addf %55, %61 : vector<4x512xf32>
    %c497_i32 = arith.constant 497 : i32
    %63 = tpu.dynamic_rotate %0 by %c497_i32 dim 1 : vector<4x512xf32>, i32 -> vector<4x512xf32>
    %64 = vector.broadcast %21 : vector<1x512xf32> to vector<4x512xf32>
    %65 = arith.mulf %63, %64 : vector<4x512xf32>
    %c6 = arith.constant 6 : index
    %c0_28 = arith.constant 0 : index
    %c0_29 = arith.constant 0 : index
    %66 = vector.load %arg2[%c6, %c0_28, %c0_29] : memref<9x4x4xf32, #tpu.memory_space<vmem>>, vector<1x4x4xf32>
    %67 = vector.shape_cast %66 : vector<1x4x4xf32> to vector<4x4xf32>
    %cst_30 = arith.constant dense<0.000000e+00> : vector<4x512xf32>
    %68 = tpu.matmul %67, %65, %cst_30 {dimension_numbers = #tpu.dot_dimension_numbers<[1], [0], [0], [1], [0, 0, 1, 1], [], []>} : vector<4x4xf32>, vector<4x512xf32>, vector<4x512xf32> -> vector<4x512xf32>
    %69 = arith.addf %62, %68 : vector<4x512xf32>
    %c496_i32 = arith.constant 496 : i32
    %70 = tpu.dynamic_rotate %0 by %c496_i32 dim 1 : vector<4x512xf32>, i32 -> vector<4x512xf32>
    %71 = vector.broadcast %10 : vector<1x512xf32> to vector<4x512xf32>
    %72 = arith.mulf %70, %71 : vector<4x512xf32>
    %c7 = arith.constant 7 : index
    %c0_31 = arith.constant 0 : index
    %c0_32 = arith.constant 0 : index
    %73 = vector.load %arg2[%c7, %c0_31, %c0_32] : memref<9x4x4xf32, #tpu.memory_space<vmem>>, vector<1x4x4xf32>
    %74 = vector.shape_cast %73 : vector<1x4x4xf32> to vector<4x4xf32>
    %cst_33 = arith.constant dense<0.000000e+00> : vector<4x512xf32>
    %75 = tpu.matmul %74, %72, %cst_33 {dimension_numbers = #tpu.dot_dimension_numbers<[1], [0], [0], [1], [0, 0, 1, 1], [], []>} : vector<4x4xf32>, vector<4x512xf32>, vector<4x512xf32> -> vector<4x512xf32>
    %76 = arith.addf %69, %75 : vector<4x512xf32>
    %c495_i32 = arith.constant 495 : i32
    %77 = tpu.dynamic_rotate %0 by %c495_i32 dim 1 : vector<4x512xf32>, i32 -> vector<4x512xf32>
    %78 = vector.broadcast %22 : vector<1x512xf32> to vector<4x512xf32>
    %79 = arith.mulf %77, %78 : vector<4x512xf32>
    %c8 = arith.constant 8 : index
    %c0_34 = arith.constant 0 : index
    %c0_35 = arith.constant 0 : index
    %80 = vector.load %arg2[%c8, %c0_34, %c0_35] : memref<9x4x4xf32, #tpu.memory_space<vmem>>, vector<1x4x4xf32>
    %81 = vector.shape_cast %80 : vector<1x4x4xf32> to vector<4x4xf32>
    %cst_36 = arith.constant dense<0.000000e+00> : vector<4x512xf32>
    %82 = tpu.matmul %81, %79, %cst_36 {dimension_numbers = #tpu.dot_dimension_numbers<[1], [0], [0], [1], [0, 0, 1, 1], [], []>} : vector<4x4xf32>, vector<4x512xf32>, vector<4x512xf32> -> vector<4x512xf32>
    %83 = arith.addf %76, %82 : vector<4x512xf32>
    %c0_37 = arith.constant 0 : index
    %c0_38 = arith.constant 0 : index
    %84 = vector.load %arg3[%c0_37, %c0_38] : memref<4x1xf32, #tpu.memory_space<vmem>>, vector<4x1xf32>
    %85 = vector.broadcast %84 : vector<4x1xf32> to vector<4x512xf32>
    %86 = arith.addf %83, %85 : vector<4x512xf32>
    %cst_39 = arith.constant 0.000000e+00 : f32
    %87 = vector.broadcast %cst_39 : f32 to vector<4x512xf32>
    %88 = arith.cmpf ogt, %86, %87 : vector<4x512xf32>
    %cst_40 = arith.constant 0.00999999977 : f32
    %89 = vector.broadcast %cst_40 : f32 to vector<4x512xf32>
    %90 = arith.mulf %89, %86 : vector<4x512xf32>
    %91 = arith.select %88, %86, %90 : vector<4x512xi1>, vector<4x512xf32>
    %cst_41 = arith.constant 0.000000e+00 : f32
    %92 = vector.broadcast %cst_41 : f32 to vector<4x512xf32>
    %c17_i32_42 = arith.constant 17 : i32
    %93 = tpu.dynamic_rotate %91 by %c17_i32_42 dim 1 : vector<4x512xf32>, i32 -> vector<4x512xf32>
    %94 = vector.broadcast %19 : vector<1x512xf32> to vector<4x512xf32>
    %95 = arith.mulf %93, %94 : vector<4x512xf32>
    %c0_43 = arith.constant 0 : index
    %c0_44 = arith.constant 0 : index
    %c0_45 = arith.constant 0 : index
    %96 = vector.load %arg4[%c0_43, %c0_44, %c0_45] : memref<9x4x4xf32, #tpu.memory_space<vmem>>, vector<1x4x4xf32>
    %97 = vector.shape_cast %96 : vector<1x4x4xf32> to vector<4x4xf32>
    %cst_46 = arith.constant dense<0.000000e+00> : vector<4x512xf32>
    %98 = tpu.matmul %97, %95, %cst_46 {dimension_numbers = #tpu.dot_dimension_numbers<[1], [0], [0], [1], [0, 0, 1, 1], [], []>} : vector<4x4xf32>, vector<4x512xf32>, vector<4x512xf32> -> vector<4x512xf32>
    %99 = arith.addf %92, %98 : vector<4x512xf32>
    %c16_i32_47 = arith.constant 16 : i32
    %100 = tpu.dynamic_rotate %91 by %c16_i32_47 dim 1 : vector<4x512xf32>, i32 -> vector<4x512xf32>
    %101 = vector.broadcast %6 : vector<1x512xf32> to vector<4x512xf32>
    %102 = arith.mulf %100, %101 : vector<4x512xf32>
    %c1_48 = arith.constant 1 : index
    %c0_49 = arith.constant 0 : index
    %c0_50 = arith.constant 0 : index
    %103 = vector.load %arg4[%c1_48, %c0_49, %c0_50] : memref<9x4x4xf32, #tpu.memory_space<vmem>>, vector<1x4x4xf32>
    %104 = vector.shape_cast %103 : vector<1x4x4xf32> to vector<4x4xf32>
    %cst_51 = arith.constant dense<0.000000e+00> : vector<4x512xf32>
    %105 = tpu.matmul %104, %102, %cst_51 {dimension_numbers = #tpu.dot_dimension_numbers<[1], [0], [0], [1], [0, 0, 1, 1], [], []>} : vector<4x4xf32>, vector<4x512xf32>, vector<4x512xf32> -> vector<4x512xf32>
    %106 = arith.addf %99, %105 : vector<4x512xf32>
    %c15_i32_52 = arith.constant 15 : i32
    %107 = tpu.dynamic_rotate %91 by %c15_i32_52 dim 1 : vector<4x512xf32>, i32 -> vector<4x512xf32>
    %108 = vector.broadcast %20 : vector<1x512xf32> to vector<4x512xf32>
    %109 = arith.mulf %107, %108 : vector<4x512xf32>
    %c2_53 = arith.constant 2 : index
    %c0_54 = arith.constant 0 : index
    %c0_55 = arith.constant 0 : index
    %110 = vector.load %arg4[%c2_53, %c0_54, %c0_55] : memref<9x4x4xf32, #tpu.memory_space<vmem>>, vector<1x4x4xf32>
    %111 = vector.shape_cast %110 : vector<1x4x4xf32> to vector<4x4xf32>
    %cst_56 = arith.constant dense<0.000000e+00> : vector<4x512xf32>
    %112 = tpu.matmul %111, %109, %cst_56 {dimension_numbers = #tpu.dot_dimension_numbers<[1], [0], [0], [1], [0, 0, 1, 1], [], []>} : vector<4x4xf32>, vector<4x512xf32>, vector<4x512xf32> -> vector<4x512xf32>
    %113 = arith.addf %106, %112 : vector<4x512xf32>
    %c1_i32_57 = arith.constant 1 : i32
    %114 = tpu.dynamic_rotate %91 by %c1_i32_57 dim 1 : vector<4x512xf32>, i32 -> vector<4x512xf32>
    %115 = vector.broadcast %14 : vector<1x512xf32> to vector<4x512xf32>
    %116 = arith.mulf %114, %115 : vector<4x512xf32>
    %c3_58 = arith.constant 3 : index
    %c0_59 = arith.constant 0 : index
    %c0_60 = arith.constant 0 : index
    %117 = vector.load %arg4[%c3_58, %c0_59, %c0_60] : memref<9x4x4xf32, #tpu.memory_space<vmem>>, vector<1x4x4xf32>
    %118 = vector.shape_cast %117 : vector<1x4x4xf32> to vector<4x4xf32>
    %cst_61 = arith.constant dense<0.000000e+00> : vector<4x512xf32>
    %119 = tpu.matmul %118, %116, %cst_61 {dimension_numbers = #tpu.dot_dimension_numbers<[1], [0], [0], [1], [0, 0, 1, 1], [], []>} : vector<4x4xf32>, vector<4x512xf32>, vector<4x512xf32> -> vector<4x512xf32>
    %120 = arith.addf %113, %119 : vector<4x512xf32>
    %c4_62 = arith.constant 4 : index
    %c0_63 = arith.constant 0 : index
    %c0_64 = arith.constant 0 : index
    %121 = vector.load %arg4[%c4_62, %c0_63, %c0_64] : memref<9x4x4xf32, #tpu.memory_space<vmem>>, vector<1x4x4xf32>
    %122 = vector.shape_cast %121 : vector<1x4x4xf32> to vector<4x4xf32>
    %cst_65 = arith.constant dense<0.000000e+00> : vector<4x512xf32>
    %123 = tpu.matmul %122, %91, %cst_65 {dimension_numbers = #tpu.dot_dimension_numbers<[1], [0], [0], [1], [0, 0, 1, 1], [], []>} : vector<4x4xf32>, vector<4x512xf32>, vector<4x512xf32> -> vector<4x512xf32>
    %124 = arith.addf %120, %123 : vector<4x512xf32>
    %c511_i32_66 = arith.constant 511 : i32
    %125 = tpu.dynamic_rotate %91 by %c511_i32_66 dim 1 : vector<4x512xf32>, i32 -> vector<4x512xf32>
    %126 = vector.broadcast %18 : vector<1x512xf32> to vector<4x512xf32>
    %127 = arith.mulf %125, %126 : vector<4x512xf32>
    %c5_67 = arith.constant 5 : index
    %c0_68 = arith.constant 0 : index
    %c0_69 = arith.constant 0 : index
    %128 = vector.load %arg4[%c5_67, %c0_68, %c0_69] : memref<9x4x4xf32, #tpu.memory_space<vmem>>, vector<1x4x4xf32>
    %129 = vector.shape_cast %128 : vector<1x4x4xf32> to vector<4x4xf32>
    %cst_70 = arith.constant dense<0.000000e+00> : vector<4x512xf32>
    %130 = tpu.matmul %129, %127, %cst_70 {dimension_numbers = #tpu.dot_dimension_numbers<[1], [0], [0], [1], [0, 0, 1, 1], [], []>} : vector<4x4xf32>, vector<4x512xf32>, vector<4x512xf32> -> vector<4x512xf32>
    %131 = arith.addf %124, %130 : vector<4x512xf32>
    %c497_i32_71 = arith.constant 497 : i32
    %132 = tpu.dynamic_rotate %91 by %c497_i32_71 dim 1 : vector<4x512xf32>, i32 -> vector<4x512xf32>
    %133 = vector.broadcast %21 : vector<1x512xf32> to vector<4x512xf32>
    %134 = arith.mulf %132, %133 : vector<4x512xf32>
    %c6_72 = arith.constant 6 : index
    %c0_73 = arith.constant 0 : index
    %c0_74 = arith.constant 0 : index
    %135 = vector.load %arg4[%c6_72, %c0_73, %c0_74] : memref<9x4x4xf32, #tpu.memory_space<vmem>>, vector<1x4x4xf32>
    %136 = vector.shape_cast %135 : vector<1x4x4xf32> to vector<4x4xf32>
    %cst_75 = arith.constant dense<0.000000e+00> : vector<4x512xf32>
    %137 = tpu.matmul %136, %134, %cst_75 {dimension_numbers = #tpu.dot_dimension_numbers<[1], [0], [0], [1], [0, 0, 1, 1], [], []>} : vector<4x4xf32>, vector<4x512xf32>, vector<4x512xf32> -> vector<4x512xf32>
    %138 = arith.addf %131, %137 : vector<4x512xf32>
    %c496_i32_76 = arith.constant 496 : i32
    %139 = tpu.dynamic_rotate %91 by %c496_i32_76 dim 1 : vector<4x512xf32>, i32 -> vector<4x512xf32>
    %140 = vector.broadcast %10 : vector<1x512xf32> to vector<4x512xf32>
    %141 = arith.mulf %139, %140 : vector<4x512xf32>
    %c7_77 = arith.constant 7 : index
    %c0_78 = arith.constant 0 : index
    %c0_79 = arith.constant 0 : index
    %142 = vector.load %arg4[%c7_77, %c0_78, %c0_79] : memref<9x4x4xf32, #tpu.memory_space<vmem>>, vector<1x4x4xf32>
    %143 = vector.shape_cast %142 : vector<1x4x4xf32> to vector<4x4xf32>
    %cst_80 = arith.constant dense<0.000000e+00> : vector<4x512xf32>
    %144 = tpu.matmul %143, %141, %cst_80 {dimension_numbers = #tpu.dot_dimension_numbers<[1], [0], [0], [1], [0, 0, 1, 1], [], []>} : vector<4x4xf32>, vector<4x512xf32>, vector<4x512xf32> -> vector<4x512xf32>
    %145 = arith.addf %138, %144 : vector<4x512xf32>
    %c495_i32_81 = arith.constant 495 : i32
    %146 = tpu.dynamic_rotate %91 by %c495_i32_81 dim 1 : vector<4x512xf32>, i32 -> vector<4x512xf32>
    %147 = vector.broadcast %22 : vector<1x512xf32> to vector<4x512xf32>
    %148 = arith.mulf %146, %147 : vector<4x512xf32>
    %c8_82 = arith.constant 8 : index
    %c0_83 = arith.constant 0 : index
    %c0_84 = arith.constant 0 : index
    %149 = vector.load %arg4[%c8_82, %c0_83, %c0_84] : memref<9x4x4xf32, #tpu.memory_space<vmem>>, vector<1x4x4xf32>
    %150 = vector.shape_cast %149 : vector<1x4x4xf32> to vector<4x4xf32>
    %cst_85 = arith.constant dense<0.000000e+00> : vector<4x512xf32>
    %151 = tpu.matmul %150, %148, %cst_85 {dimension_numbers = #tpu.dot_dimension_numbers<[1], [0], [0], [1], [0, 0, 1, 1], [], []>} : vector<4x4xf32>, vector<4x512xf32>, vector<4x512xf32> -> vector<4x512xf32>
    %152 = arith.addf %145, %151 : vector<4x512xf32>
    %c0_86 = arith.constant 0 : index
    %c0_87 = arith.constant 0 : index
    %153 = vector.load %arg5[%c0_86, %c0_87] : memref<4x1xf32, #tpu.memory_space<vmem>>, vector<4x1xf32>
    %154 = vector.broadcast %153 : vector<4x1xf32> to vector<4x512xf32>
    %155 = arith.addf %152, %154 : vector<4x512xf32>
    %156 = arith.addf %0, %155 : vector<4x512xf32>
    %c0_88 = arith.constant 0 : index
    %c0_89 = arith.constant 0 : index
    %157 = vector.load %arg6[%c0_88, %c0_89] : memref<4x512xf32, #tpu.memory_space<vmem>>, vector<4x512xf32>
    tpu.vector_store %arg6[%c0_88, %c0_89], %156 {strides = array<i32>} : memref<4x512xf32, #tpu.memory_space<vmem>>, vector<4x512xf32>,
    return
  }
}

</mosaic_0001>

<bundles_post_ra>
// kernel: tile.10
= control target key start
LH: loop header
LB: loop body
LE: loop exit
PB: predicated region body
PF: predicated region fallthrough
CT: control target
= control target key end

     0   :  { %s7_s6 = smov 3  ;;  %s21_s9 = smov 3  ;;  %vm4_vm0 = vcmask 130048   ;;  %vm11_vm1 = vcmask 1048448   ;;  %vm18_vm2 = vcmask 917248   ;;  %vm25_vm3 = vcmask 786048   ;;  %s119_s0 = inlined_call_operand.vmem [shape: s32[16,16], index: 0, kind: input, shape index: {}]   ;;  %s120_s1 = inlined_call_operand.vmem [shape: s32[256], index: 1, kind: output, shape index: {}]  }
   0x1   :  { %v61_v0 = vld [vmem:[%s119_s0 + $0x7] ss:$8 sm:%s7_s6]   ;;  %s75_s10 = smov 112   ;;  %v63_v1 = vld [vmem:[%s119_s0 + $0x5] ss:$8 sm:%s21_s9]   ;;  %s76_s13 = smov 80  }
   0x2   :  { %9 = vrot.lane.b32.xlu0 %v61_v0, %s75_s10  ;;  %23 = vrot.lane.b32.xlu1 %v63_v1, %s76_s13  ;;  %s14_s14 = smov 3  ;;  %s28_s15 = smov 3  ;;  %vm32_vm4 = vcmask 654848   ;;  %vm39_vm5 = vcmask 523648   ;;  %vm46_vm6 = vcmask 392448   ;;  %vm53_vm7 = vcmask 261248  }
   0x3   :  { %s35_s16 = smov 3  ;;  %v62_v3 = vld [vmem:[%s119_s0 + $0x6] ss:$8 sm:%s14_s14]   ;;  %s77_s21 = smov 48   ;;  %v64_v4 = vld [vmem:[%s119_s0 + $0x4] ss:$8 sm:%s28_s15]  }
   0x4   :  { %v65_v2 = vld [vmem:[%s119_s0 + $0x3] ss:$8 sm:%s35_s16]   ;;  %s42_s24 = smov 3  ;;  %s78_s25 = smov 96  }
   0x5   :  { %37 = vrot.lane.b32.xlu2 %v65_v2, %s77_s21  ;;  %s79_s26 = smov 64   ;;  %s49_s27 = smov 3  ;;  %v66_v5 = vld [vmem:[%s119_s0 + $0x2] ss:$8 sm:%s42_s24]  }
   0x6   :  { %v67_v6 = vld [vmem:[%s119_s0 + $0x1] ss:$8 sm:%s49_s27]   ;;  %s80_s3 = smov 32   ;;  %s81_s4 = smov 16  }
   0x7   :  { %s2_s5 = smov 3 }
   0x8   :  { %v3_v7 = vld [vmem:[%s119_s0] ss:$8 sm:%s2_s5]  }
   0x9   :  { %5 = vst.msk [vmem:[#allocation0] sm:$0x3] %vm4_vm0, %v3_v7  }
   0xa   :  { %16 = vrot.lane.b32.xlu0 %v62_v3, %s78_s25  ;;  %30 = vrot.lane.b32.xlu1 %v64_v4, %s79_s26 }
   0xd   :  { %44 = vrot.lane.b32.xlu2 %v66_v5, %s80_s3 }
  0x12   :  { %51 = vrot.lane.b32.xlu0 %v67_v6, %s81_s4 }
  0x5f   :  { %v38_v8 = vpop.permute.xlu2 %37  }
  0x67   :  { %v45_v9 = vpop.permute.xlu2 %44  }
  0x74   :  { %v10_v10 = vpop.permute.xlu0 %9   ;;  %v24_v11 = vpop.permute.xlu1 %23  }
  0x75   :  { %12 = vst.msk [vmem:[#allocation0] sm:$0x3] %vm11_vm1, %v10_v10  }
  0x7c   :  { %v17_v12 = vpop.permute.xlu0 %16   ;;  %v31_v13 = vpop.permute.xlu1 %30  }
  0x7d   :  { %19 = vst.msk [vmem:[#allocation0] sm:$0x3] %vm18_vm2, %v17_v12  }
  0x7e   :  { %26 = vst.msk [vmem:[#allocation0] sm:$0x3] %vm25_vm3, %v24_v11  }
  0x7f   :  { %33 = vst.msk [vmem:[#allocation0] sm:$0x3] %vm32_vm4, %v31_v13  }
  0x80   :  { %40 = vst.msk [vmem:[#allocation0] sm:$0x3] %vm39_vm5, %v38_v8  }
  0x81   :  { %47 = vst.msk [vmem:[#allocation0] sm:$0x3] %vm46_vm6, %v45_v9  }
  0x84   :  { %v52_v14 = vpop.permute.xlu0 %51  }
  0x85   :  { %54 = vst.msk [vmem:[#allocation0] sm:$0x3] %vm53_vm7, %v52_v14  }
  0x8c   :  { %v57_v15 = vld [vmem:[#allocation0] sm:$0x3] }
  0x8d   :  { %60 = vst [vmem:[%s120_s1] sm:$0x3] %v57_v15 }

// kernel: tile.17
= control target key start
LH: loop header
LB: loop body
LE: loop exit
PB: predicated region body
PF: predicated region fallthrough
CT: control target
= control target key end

     0   :  { %s88_s8 = smov 112   ;;  %s89_s11 = smov 80   ;;  %vm3_vm0 = vcmask 130048   ;;  %vm9_vm1 = vcmask 1048448   ;;  %vm15_vm2 = vcmask 917248   ;;  %vm21_vm3 = vcmask 786048   ;;  %s141_s0 = inlined_call_operand.vmem [shape: s32[32,16], index: 0, kind: input, shape index: {}]   ;;  %s142_s1 = inlined_call_operand.vmem [shape: s32[1,512], index: 1, kind: output, shape index: {}]  }
   0x1   :  { %v71_v0 = vld [vmem:[%s141_s0 + $0x7] ss:$8 sm:$0xf]   ;;  %v73_v1 = vld [vmem:[%s141_s0 + $0x5] ss:$8 sm:$0xf]  }
   0x2   :  { %7 = vrot.lane.b32.xlu0 %v71_v0, %s88_s8  ;;  %19 = vrot.lane.b32.xlu1 %v73_v1, %s89_s11  ;;  %v75_v2 = vld [vmem:[%s141_s0 + $0x3] ss:$8 sm:$0xf]   ;;  %s90_s14 = smov 48   ;;  %s91_s19 = smov 96   ;;  %vm27_vm4 = vcmask 654848  }
   0x3   :  { %31 = vrot.lane.b32.xlu2 %v75_v2, %s90_s14  ;;  %v72_v3 = vld [vmem:[%s141_s0 + $0x6] ss:$8 sm:$0xf]   ;;  %v74_v4 = vld [vmem:[%s141_s0 + $0x4] ss:$8 sm:$0xf]  }
   0x4   :  { %s92_s20 = smov 64   ;;  %v76_v5 = vld [vmem:[%s141_s0 + $0x2] ss:$8 sm:$0xf]   ;;  %s93_s23 = smov 32   ;;  %vm33_vm5 = vcmask 523648  }
   0x5   :  { %v77_v6 = vld [vmem:[%s141_s0 + $0x1] ss:$8 sm:$0xf]   ;;  %s94_s26 = smov 16   ;;  %vm39_vm6 = vcmask 392448   ;;  %vm45_vm7 = vcmask 261248  }
   0x6   :  { %v2_v7 = vld [vmem:[%s141_s0] ss:$8 sm:$0xf]  }
   0x7   :  { %4 = vst.msk [vmem:[#allocation0] ss:$8 sm:$0xf] %vm3_vm0, %v2_v7  }
   0xa   :  { %13 = vrot.lane.b32.xlu0 %v72_v3, %s91_s19  ;;  %25 = vrot.lane.b32.xlu1 %v74_v4, %s92_s20 }
   0xb   :  { %37 = vrot.lane.b32.xlu2 %v76_v5, %s93_s23 }
  0x12   :  { %43 = vrot.lane.b32.xlu0 %v77_v6, %s94_s26 }
  0x5d   :  { %v32_v8 = vpop.permute.xlu2 %31  }
  0x65   :  { %v38_v9 = vpop.permute.xlu2 %37  }
  0x74   :  { %v8_v10 = vpop.permute.xlu0 %7   ;;  %v20_v11 = vpop.permute.xlu1 %19  }
  0x75   :  { %10 = vst.msk [vmem:[#allocation0] ss:$8 sm:$0xf] %vm9_vm1, %v8_v10  }
  0x7c   :  { %v14_v12 = vpop.permute.xlu0 %13   ;;  %v26_v13 = vpop.permute.xlu1 %25  }
  0x7d   :  { %16 = vst.msk [vmem:[#allocation0] ss:$8 sm:$0xf] %vm15_vm2, %v14_v12  }
  0x7e   :  { %22 = vst.msk [vmem:[#allocation0] ss:$8 sm:$0xf] %vm21_vm3, %v20_v11  }
  0x7f   :  { %28 = vst.msk [vmem:[#allocation0] ss:$8 sm:$0xf] %vm27_vm4, %v26_v13  }
  0x80   :  { %34 = vst.msk [vmem:[#allocation0] ss:$8 sm:$0xf] %vm33_vm5, %v32_v8  }
  0x81   :  { %40 = vst.msk [vmem:[#allocation0] ss:$8 sm:$0xf] %vm39_vm6, %v38_v9  }
  0x84   :  { %v44_v14 = vpop.permute.xlu0 %43  }
  0x85   :  { %46 = vst.msk [vmem:[#allocation0] ss:$8 sm:$0xf] %vm45_vm7, %v44_v14  }
  0x8c   :  { %v49_v15 = vld [vmem:[#allocation0] sm:$0x1]  ;;  %v54_v16 = vld [vmem:[#allocation0 + $0x8] sm:$0x1]  ;;  %v60_v17 = vld [vmem:[#allocation0 + $0x10] sm:$0x1] }
  0x8d   :  { %52 = vst [vmem:[%s142_s1] sm:$0x1] %v49_v15  ;;  %v66_v18 = vld [vmem:[#allocation0 + $0x18] sm:$0x1] }
  0x8e   :  { %78 = vst [vmem:[%s142_s1 + $0x1] sm:$0x1] %v54_v16 }
  0x8f   :  { %79 = vst [vmem:[%s142_s1 + $0x2] sm:$0x1] %v60_v17 }
  0x90   :  { %80 = vst [vmem:[%s142_s1 + $0x3] sm:$0x1] %v66_v18 }

// kernel: res_block.1
= control target key start
LH: loop header
LB: loop body
LE: loop exit
PB: predicated region body
PF: predicated region fallthrough
CT: control target
= control target key end

     0   :  { %s2504_s25 = smov 17   ;;  %s2506_s26 = smov 15   ;;  %v65_v44 = vlaneseq  ;;  %v2512_v45 = vmov 0.0   ;;  %vm129_vm5 = vcmask 1043456   ;;  %vm125_vm6 = vcmask 31744   ;;  %s3263_s0 = inlined_call_operand.vmem [shape: f32[4,512], index: 0, kind: input, shape index: {}]   ;;  %s3264_s1 = inlined_call_operand.vmem [shape: s32[2,512], index: 1, kind: input, shape index: {}]   ;;  %s3265_s2 = inlined_call_operand.vmem [shape: f32[9,4,4], index: 2, kind: input, shape index: {}]   ;;  %s3266_s3 = inlined_call_operand.vmem [shape: f32[4,1], index: 3, kind: input, shape index: {}]   ;;  %s3267_s5 = inlined_call_operand.vmem [shape: f32[4,1], index: 5, kind: input, shape index: {}]   ;;  %s3268_s4 = inlined_call_operand.vmem [shape: f32[9,4,4], index: 4, kind: input, shape index: {}]   ;;  %s3269_s6 = inlined_call_operand.vmem [shape: f32[4,512], index: 6, kind: output, shape index: {}]  }
   0x1   :  { %v2552_v0 = vld [vmem:[%s3263_s0] sm:$0xff]  ;;  %v2557_v1 = vld [vmem:[%s3263_s0 + $0x8] sm:$0xff]  ;;  %s2505_s0 = smov 16   ;;  %s2507_s27 = smov 1  }
   0x2   :  { %46 = vst [vmem:[#allocation1] ss:$2 sm:$0xff] %v2552_v0  ;;  %s2508_s28 = smov 127   ;;  %s2509_s29 = smov 113   ;;  %v2634_v49 = vand.u32 127, %v65_v44 }
   0x3   :  { %48 = vst [vmem:[#allocation1 + $0x10] ss:$2 sm:$0xff] %v2557_v1  ;;  %s2510_s30 = smov 112   ;;  %s2511_s7 = smov 111  }
   0x4   :  { %v2620_v41 = vld [vmem:[%s3264_s1] ss:$2 sm:$0xf]  ;;  %v2327_v42 = vld [vmem:[%s3264_s1 + $0x1] ss:$2 sm:$0xf] }
   0x5   :  { %vm28_vm0 = vcmp.ge.s32.totalorder %v2620_v41, 1  ;;  %vm34_vm1 = vcmp.ge.s32.totalorder %v2327_v42, 1  ;;  %vm67_vm2 = vcmp.lt.s32.totalorder %v2634_v49, 17  ;;  %vm105_vm3 = vcmp.lt.s32.totalorder %v2634_v49, 16 }
   0x6   :  { %v2629_v46 = vsel %vm28_vm0, 1.0, %v2512_v45  ;;  %v2632_v47 = vsel %vm34_vm1, 1.0, %v2512_v45  ;;  %vm37_vm4 = vcmp.lt.s32.totalorder %v2327_v42, 15  ;;  %vm336_vm7 = vcmp.lt.s32.totalorder %v2634_v49, 15 }
   0x7   :  { %v2638_v51 = vmul.f32 %v2632_v47, %v2629_v46  ;;  %v113_v54 = vperm.slane %v2629_v46, 2  ;;  %v114_v55 = vperm.slane %v2629_v46, 3  ;;  %v2655_v62 = vsel %vm37_vm4, 1.0, %v2512_v45 }
   0x8   :  { %vm474_vm8 = vcmp.lt.s32.totalorder %v2634_v49, 1  ;;  %vm31_vm9 = vcmp.lt.s32.totalorder %v2620_v41, 15  ;;  %vm716_vm10 = vcmp.lt.s32.totalorder %v2634_v49, 127  ;;  %v3283_v41 = vperm.slane %v2655_v62, 1 }
   0x9   :  { %v50_v2 = vld.sshfl [vmem:[#allocation1 + $0x8] sm:$0xff pattern:$0x75316420]  ;;  %v49_v3 = vld.sshfl [vmem:[#allocation1] sm:$0xff pattern:$0x75316420] }
   0xa   :  { %59 = vrot.lane.b32.xlu1 %v50_v2, %s2504_s25  ;;  %86 = vst [vmem:[#allocation1] ss:$2 sm:$0xff] %v2552_v0  ;;  %v51_v4 = vld.sshfl [vmem:[#allocation1 + $0x10] sm:$0xff pattern:$0x75316420]  ;;  %v76_v53 = vperm.slane %v2638_v51, 3 }
   0xb   :  { %v52_v5 = vld.sshfl [vmem:[#allocation1 + $0x18] sm:$0xff pattern:$0x75316420]  ;;  %61 = vrot.lane.b32.xlu2 %v51_v4, %s2504_s25  ;;  %v3294_v57 = vperm.slane %v2638_v51, 2  ;;  %vm854_vm11 = vcmp.lt.s32.totalorder %v2634_v49, 113  ;;  %vm992_vm12 = vcmp.lt.s32.totalorder %v2634_v49, 112 }
   0xc   :  { %88 = vst [vmem:[#allocation1 + $0x10] ss:$2 sm:$0xff] %v2557_v1  ;;  %vm1130_vm13 = vcmp.lt.s32.totalorder %v2634_v49, 111 }
  0x11   :  { %v90_v6 = vld.sshfl [vmem:[#allocation1 + $0x8] sm:$0xff pattern:$0x75316420]  ;;  %v89_v7 = vld.sshfl [vmem:[#allocation1] sm:$0xff pattern:$0x75316420] }
  0x12   :  { %99 = vrot.lane.b32.xlu0 %v90_v6, %s2505_s0  ;;  %317 = vst [vmem:[#allocation1] ss:$2 sm:$0xff] %v2552_v0 }
  0x13   :  { %v92_v8 = vld.sshfl [vmem:[#allocation1 + $0x18] sm:$0xff pattern:$0x75316420]  ;;  %v91_v9 = vld.sshfl [vmem:[#allocation1 + $0x10] sm:$0xff pattern:$0x75316420]  ;;  %63 = vrot.lane.b32.xlu2 %v52_v5, %s2504_s25 }
  0x14   :  { %103 = vrot.lane.b32.xlu1 %v92_v8, %s2505_s0  ;;  %319 = vst [vmem:[#allocation1 + $0x10] ss:$2 sm:$0xff] %v2557_v1  ;;  %v2332_v5 = vld [vmem:[%s3265_s2 + $0x4] sm:$0xf]  ;;  %v73_v8 = vperm.slane %v2638_v51, 0 }
  0x19   :  { %v320_v10 = vld.sshfl [vmem:[#allocation1] sm:$0xff pattern:$0x75316420]  ;;  %v321_v11 = vld.sshfl [vmem:[#allocation1 + $0x8] sm:$0xff pattern:$0x75316420] }
  0x1a   :  { %101 = vrot.lane.b32.xlu0 %v91_v9, %s2505_s0  ;;  %455 = vst [vmem:[#allocation1] ss:$2 sm:$0xff] %v2552_v0  ;;  %v111_v9 = vperm.slane %v2629_v46, 0 }
  0x1b   :  { %v322_v12 = vld.sshfl [vmem:[#allocation1 + $0x10] sm:$0xff pattern:$0x75316420]  ;;  %v323_v13 = vld.sshfl [vmem:[#allocation1 + $0x18] sm:$0xff pattern:$0x75316420]  ;;  %330 = vrot.lane.b32.xlu2 %v321_v11, %s2506_s26 }
  0x1c   :  { %57 = vrot.lane.b32.xlu1 %v49_v3, %s2504_s25  ;;  %457 = vst [vmem:[#allocation1 + $0x10] ss:$2 sm:$0xff] %v2557_v1 }
  0x21   :  { %v459_v14 = vld.sshfl [vmem:[#allocation1 + $0x8] sm:$0xff pattern:$0x75316420]  ;;  %v458_v15 = vld.sshfl [vmem:[#allocation1] sm:$0xff pattern:$0x75316420] }
  0x22   :  { %97 = vrot.lane.b32.xlu0 %v89_v7, %s2505_s0  ;;  %595 = vst [vmem:[#allocation1] ss:$2 sm:$0xff] %v2552_v0  ;;  %v2672_v7 = vmul.f32 %v2655_v62, %v2629_v46 }
  0x23   :  { %v460_v16 = vld.sshfl [vmem:[#allocation1 + $0x10] sm:$0xff pattern:$0x75316420]  ;;  %v461_v17 = vld.sshfl [vmem:[#allocation1 + $0x18] sm:$0xff pattern:$0x75316420]  ;;  %328 = vrot.lane.b32.xlu2 %v320_v10, %s2506_s26 }
  0x24   :  { %334 = vrot.lane.b32.xlu1 %v323_v13, %s2506_s26  ;;  %597 = vst [vmem:[#allocation1 + $0x10] ss:$2 sm:$0xff] %v2557_v1  ;;  %v112_v10 = vperm.slane %v2629_v46, 1  ;;  %v74_v13 = vperm.slane %v2638_v51, 1 }
  0x29   :  { %v2580_v18 = vld.sshfl [vmem:[#allocation1] sm:$0xff pattern:$0x75316420]  ;;  %v2582_v19 = vld.sshfl [vmem:[#allocation1 + $0x8] sm:$0xff pattern:$0x75316420] }
  0x2a   :  { %332 = vrot.lane.b32.xlu0 %v322_v12, %s2506_s26  ;;  %697 = vst [vmem:[#allocation1] ss:$2 sm:$0xff] %v2552_v0 }
  0x2b   :  { %v2586_v20 = vld.sshfl [vmem:[#allocation1 + $0x10] sm:$0xff pattern:$0x75316420]  ;;  %v2588_v21 = vld.sshfl [vmem:[#allocation1 + $0x18] sm:$0xff pattern:$0x75316420]  ;;  %472 = vrot.lane.b32.xlu2 %v461_v17, %s2507_s27 }
  0x2c   :  { %470 = vrot.lane.b32.xlu1 %v460_v16, %s2507_s27  ;;  %699 = vst [vmem:[#allocation1 + $0x10] ss:$2 sm:$0xff] %v2557_v1  ;;  %v3293_v16 = vperm.slane %v2672_v7, 1 }
  0x31   :  { %v700_v22 = vld.sshfl [vmem:[#allocation1] sm:$0xff pattern:$0x75316420]  ;;  %v701_v23 = vld.sshfl [vmem:[#allocation1 + $0x8] sm:$0xff pattern:$0x75316420] }
  0x32   :  { %468 = vrot.lane.b32.xlu0 %v459_v14, %s2507_s27  ;;  %835 = vst [vmem:[#allocation1] ss:$2 sm:$0xff] %v2552_v0 }
  0x33   :  { %v702_v24 = vld.sshfl [vmem:[#allocation1 + $0x10] sm:$0xff pattern:$0x75316420]  ;;  %v703_v25 = vld.sshfl [vmem:[#allocation1 + $0x18] sm:$0xff pattern:$0x75316420] }
  0x34   :  { %708 = vrot.lane.b32.xlu1 %v700_v22, %s2508_s28  ;;  %837 = vst [vmem:[#allocation1 + $0x10] ss:$2 sm:$0xff] %v2557_v1  ;;  %712 = vrot.lane.b32.xlu2 %v702_v24, %s2508_s28 }
  0x39   :  { %v838_v26 = vld.sshfl [vmem:[#allocation1] sm:$0xff pattern:$0x75316420]  ;;  %v839_v27 = vld.sshfl [vmem:[#allocation1 + $0x8] sm:$0xff pattern:$0x75316420] }
  0x3a   :  { %466 = vrot.lane.b32.xlu0 %v458_v15, %s2507_s27  ;;  %973 = vst [vmem:[#allocation1] ss:$2 sm:$0xff] %v2552_v0  ;;  %v3291_v15 = vperm.slane %v2672_v7, 0 }
  0x3b   :  { %v841_v28 = vld.sshfl [vmem:[#allocation1 + $0x18] sm:$0xff pattern:$0x75316420]  ;;  %v840_v29 = vld.sshfl [vmem:[#allocation1 + $0x10] sm:$0xff pattern:$0x75316420] }
  0x3c   :  { %710 = vrot.lane.b32.xlu1 %v701_v23, %s2508_s28  ;;  %975 = vst [vmem:[#allocation1 + $0x10] ss:$2 sm:$0xff] %v2557_v1  ;;  %846 = vrot.lane.b32.xlu2 %v838_v26, %s2509_s29 }
  0x41   :  { %v976_v30 = vld.sshfl [vmem:[#allocation1] sm:$0xff pattern:$0x75316420]  ;;  %v977_v31 = vld.sshfl [vmem:[#allocation1 + $0x8] sm:$0xff pattern:$0x75316420] }
  0x42   :  { %714 = vrot.lane.b32.xlu0 %v703_v25, %s2508_s28  ;;  %1111 = vst [vmem:[#allocation1] ss:$2 sm:$0xff] %v2552_v0 }
  0x43   :  { %v978_v32 = vld.sshfl [vmem:[#allocation1 + $0x10] sm:$0xff pattern:$0x75316420]  ;;  %v979_v33 = vld.sshfl [vmem:[#allocation1 + $0x18] sm:$0xff pattern:$0x75316420] }
  0x44   :  { %852 = vrot.lane.b32.xlu1 %v841_v28, %s2509_s29  ;;  %1113 = vst [vmem:[#allocation1 + $0x10] ss:$2 sm:$0xff] %v2557_v1  ;;  %848 = vrot.lane.b32.xlu2 %v839_v27, %s2509_s29 }
  0x49   :  { %v1114_v34 = vld.sshfl [vmem:[#allocation1] sm:$0xff pattern:$0x75316420]  ;;  %v1115_v36 = vld.sshfl [vmem:[#allocation1 + $0x8] sm:$0xff pattern:$0x75316420] }
  0x4a   :  { %850 = vrot.lane.b32.xlu0 %v840_v29, %s2509_s29 }
  0x4b   :  { %v1116_v35 = vld.sshfl [vmem:[#allocation1 + $0x10] sm:$0xff pattern:$0x75316420]  ;;  %v1117_v37 = vld.sshfl [vmem:[#allocation1 + $0x18] sm:$0xff pattern:$0x75316420] }
  0x4c   :  { %988 = vrot.lane.b32.xlu1 %v978_v32, %s2510_s30  ;;  %990 = vrot.lane.b32.xlu2 %v979_v33, %s2510_s30 }
  0x52   :  { %984 = vrot.lane.b32.xlu0 %v976_v30, %s2510_s30 }
  0x54   :  { %1122 = vrot.lane.b32.xlu1 %v1114_v34, %s2511_s7  ;;  %1126 = vrot.lane.b32.xlu2 %v1116_v35, %s2511_s7  ;;  %v3292_v34 = vperm.slane %v2672_v7, 2  ;;  %v3290_v35 = vperm.slane %v2672_v7, 3 }
  0x5a   :  { %986 = vrot.lane.b32.xlu0 %v977_v31, %s2510_s30  ;;  %v85_v31 = vld [vmem:[%s3265_s2] sm:$0xf] }
  0x5c   :  { %1124 = vrot.lane.b32.xlu1 %v1115_v36, %s2511_s7 }
  0x62   :  { %1128 = vrot.lane.b32.xlu0 %v1117_v37, %s2511_s7  ;;  %v3288_v37 = vperm.slane %v2632_v47, 3 }
  0x65   :  { %v62_v38 = vpop.permute.xlu2 %61 }
  0x6d   :  { %v64_v39 = vpop.permute.xlu2 %63 }
  0x6e   :  { %v68_v56 = vsel %vm67_vm2, %v62_v38, %v64_v39 }
  0x6f   :  { %v84_v63 = vmul.f32 %v76_v53, %v68_v56  ;;  %v3289_v56 = vperm.slane %v2632_v47, 2 }
  0x75   :  { %v2625_v43 = vpop.permute.xlu2 %330 }
  0x7c   :  { %v60_v40 = vpop.permute.xlu1 %59 }
  0x7d   :  { %v329_v52 = vpop.permute.xlu2 %328  ;;  %v69_v59 = vsel %vm67_vm2, %v60_v40, %v62_v38 }
  0x7e   :  { %v83_v6 = vmul.f32 %v3294_v57, %v69_v59  ;;  %v339_v24 = vsel %vm336_vm7, %v329_v52, %v2625_v43 }
  0x7f   :  { %v351_v33 = vmul.f32 %v3293_v16, %v339_v24 }
  0x84   :  { %v100_v48 = vpop.permute.xlu0 %99 }
  0x85   :  { %v2682_v11 = vpop.permute.xlu2 %472 }
  0x86   :  { %v104_v50 = vpop.permute.xlu1 %103 }
  0x8c   :  { %v102_v58 = vpop.permute.xlu0 %101 }
  0x8d   :  { %v106_v60 = vsel %vm105_vm3, %v102_v58, %v104_v50  ;;  %v107_v61 = vsel %vm105_vm3, %v100_v48, %v102_v58 }
  0x8e   :  { %v58_v2 = vpop.permute.xlu1 %57  ;;  %v121_v3 = vmul.f32 %v113_v54, %v107_v61  ;;  %v122_v4 = vmul.f32 %v114_v55, %v106_v60  ;;  %v2729_v38 = vpop.permute.xlu2 %712 }
  0x8f   :  { %v71_v12 = vsel %vm67_vm2, %v64_v39, %v58_v2  ;;  %v70_v17 = vsel %vm67_vm2, %v58_v2, %v60_v40  ;;  %v2358_v2 = vld [vmem:[%s3265_s2 + $0xc] sm:$0xf] }
  0x90   :  { %2337 = vmatpush.msk.msra.mxu2 %vm129_vm5, %v121_v3  ;;  %2339 = vmatpush.msk.msra.mxu3 %vm129_vm5, %v122_v4  ;;  %v81_v25 = vmul.f32 %v73_v8, %v71_v12  ;;  %v82_v30 = vmul.f32 %v74_v13, %v70_v17  ;;  %v3285_v3 = vperm.slane %v2632_v47, 1  ;;  %v2776_v4 = vsel %vm31_vm9, 1.0, %v2512_v45 }
  0x91   :  { %2338 = vmatmul.msk.f32.vlgmr.msra.gmra.mxu2 %vm125_vm6, %v2332_v5  ;;  %2340 = vmatmul.msk.f32.vlgmr.msra.gmra.mxu3 %vm125_vm6, %v2332_v5  ;;  %v3284_v45 = vperm.slane %v2655_v62, 0 }
  0x92   :  { %2345 = vmatpush.msk.msrb.mxu2 %vm129_vm5, %v83_v6  ;;  %2347 = vmatpush.msk.msrb.mxu3 %vm129_vm5, %v84_v63 }
  0x94   :  { %v98_v14 = vpop.permute.xlu0 %97 }
  0x95   :  { %v108_v22 = vsel %vm105_vm3, %v98_v14, %v100_v48  ;;  %v109_v23 = vsel %vm105_vm3, %v104_v50, %v98_v14 }
  0x96   :  { %v335_v26 = vpop.permute.xlu1 %334  ;;  %v119_v27 = vmul.f32 %v111_v9, %v109_v23  ;;  %v120_v28 = vmul.f32 %v112_v10, %v108_v22  ;;  %v847_v63 = vpop.permute.xlu2 %846  ;;  %v2792_v22 = vmul.f32 %v2632_v47, %v2776_v4 }
  0x97   :  { %v340_v29 = vsel %vm336_vm7, %v335_v26, %v329_v52  ;;  %v2349_v52 = vld [vmem:[%s3265_s2 + $0x8] sm:$0xf] }
  0x98   :  { %2333 = vmatpush.msk.msra.mxu0 %vm129_vm5, %v119_v27  ;;  %2335 = vmatpush.msk.msra.mxu1 %vm129_vm5, %v120_v28  ;;  %v350_v32 = vmul.f32 %v3291_v15, %v340_v29  ;;  %v3282_v28 = vperm.slane %v2655_v62, 2  ;;  %v3287_v29 = vperm.slane %v2655_v62, 3 }
  0x99   :  { %2334 = vmatmul.msk.f32.vlgmr.msra.gmra.mxu0 %vm125_vm6, %v2332_v5  ;;  %2336 = vmatmul.msk.f32.vlgmr.msra.gmra.mxu1 %vm125_vm6, %v2332_v5 }
  0x9a   :  { %2341 = vmatpush.msk.msrb.mxu0 %vm129_vm5, %v81_v25  ;;  %2343 = vmatpush.msk.msrb.mxu1 %vm129_vm5, %v82_v30  ;;  %v2367_v25 = vld [vmem:[%s3265_s2 + $0x10] sm:$0xf]  ;;  %v3281_v30 = vperm.slane %v2792_v22, 0 }
  0x9b   :  { %2346 = vmatmul.msk.f32.vlgmr.msrb.gmra.mxu2 %vm125_vm6, %v85_v31  ;;  %2348 = vmatmul.msk.f32.vlgmr.msrb.gmra.mxu3 %vm125_vm6, %v85_v31 }
  0x9c   :  { %v333_v36 = vpop.permute.xlu0 %332  ;;  %2350 = vmatpush.msk.msra.mxu0 %vm129_vm5, %v350_v32  ;;  %2352 = vmatpush.msk.msra.mxu1 %vm129_vm5, %v351_v33 }
  0x9d   :  { %v337_v39 = vsel %vm336_vm7, %v333_v36, %v335_v26  ;;  %v338_v40 = vsel %vm336_vm7, %v2625_v43, %v333_v36 }
  0x9e   :  { %v471_v42 = vpop.permute.xlu1 %470  ;;  %v352_v44 = vmul.f32 %v3292_v34, %v338_v40  ;;  %v353_v48 = vmul.f32 %v3290_v35, %v337_v39  ;;  %v849_v26 = vpop.permute.xlu2 %848 }
  0x9f   :  { %v475_v50 = vsel %vm474_vm8, %v471_v42, %v2682_v11 }
  0xa0   :  { %2354 = vmatpush.msk.msra.mxu2 %vm129_vm5, %v352_v44  ;;  %2356 = vmatpush.msk.msra.mxu3 %vm129_vm5, %v353_v48  ;;  %v491_v43 = vmul.f32 %v3288_v37, %v475_v50  ;;  %v3279_v50 = vperm.slane %v2792_v22, 2 }
  0xa1   :  { %2342 = vmatmul.msk.f32.vlgmr.msrb.gmra.mxu0 %vm125_vm6, %v85_v31  ;;  %2344 = vmatmul.msk.f32.vlgmr.msrb.gmra.mxu1 %vm125_vm6, %v85_v31  ;;  %v857_v31 = vsel %vm854_vm11, %v847_v63, %v849_v26 }
  0xa2   :  { %2365 = vmatpush.msk.msrb.mxu3 %vm129_vm5, %v491_v43  ;;  %v1249_v43 = vld [vmem:[%s3266_s3] sm:$0xf] }
  0xa3   :  { %2355 = vmatmul.msk.f32.vlgmr.msra.gmra.mxu2 %vm125_vm6, %v2349_v52  ;;  %2357 = vmatmul.msk.f32.vlgmr.msra.gmra.mxu3 %vm125_vm6, %v2349_v52 }
  0xa4   :  { %v469_v58 = vpop.permute.xlu0 %468  ;;  %2374 = vmatpush.msk.msra.mxu3 %vm129_vm5, %v2588_v21  ;;  %v3286_v21 = vperm.slane %v2632_v47, 0 }
  0xa5   :  { %v476_v59 = vsel %vm474_vm8, %v469_v58, %v471_v42  ;;  %v868_v42 = vmul.f32 %v3281_v30, %v857_v31  ;;  %v2891_v31 = vmul.f32 %v2655_v62, %v2776_v4 }
  0xa6   :  { %v490_v60 = vmul.f32 %v3289_v56, %v476_v59  ;;  %v709_v61 = vpop.permute.xlu1 %708  ;;  %v3277_v59 = vperm.slane %v2776_v4, 2 }
  0xa8   :  { %2363 = vmatpush.msk.msrb.mxu2 %vm129_vm5, %v490_v60  ;;  %v991_v60 = vpop.permute.xlu2 %990 }
  0xa9   :  { %2351 = vmatmul.msk.f32.vlgmr.msra.gmra.mxu0 %vm125_vm6, %v2349_v52  ;;  %2353 = vmatmul.msk.f32.vlgmr.msra.gmra.mxu1 %vm125_vm6, %v2349_v52  ;;  %v3280_v52 = vperm.slane %v2792_v22, 1 }
  0xaa   :  { %2372 = vmatpush.msk.msra.mxu2 %vm129_vm5, %v2586_v20 }
  0xab   :  { %2364 = vmatmul.msk.f32.vlgmr.msrb.gmra.mxu2 %vm125_vm6, %v2358_v2  ;;  %2366 = vmatmul.msk.f32.vlgmr.msrb.gmra.mxu3 %vm125_vm6, %v2358_v2 }
  0xac   :  { %v467_v5 = vpop.permute.xlu0 %466 }
  0xad   :  { %v477_v6 = vsel %vm474_vm8, %v467_v5, %v469_v58  ;;  %v478_v12 = vsel %vm474_vm8, %v2682_v11, %v467_v5 }
  0xae   :  { %v488_v20 = vmul.f32 %v3286_v21, %v478_v12  ;;  %v489_v14 = vmul.f32 %v3285_v3, %v477_v6  ;;  %v711_v17 = vpop.permute.xlu1 %710 }
  0xaf   :  { %v718_v23 = vsel %vm716_vm10, %v711_v17, %v2729_v38  ;;  %v719_v11 = vsel %vm716_vm10, %v709_v61, %v711_v17 }
  0xb0   :  { %v731_v24 = vmul.f32 %v3283_v41, %v718_v23  ;;  %2359 = vmatpush.msk.msrb.mxu0 %vm129_vm5, %v488_v20  ;;  %2361 = vmatpush.msk.msrb.mxu1 %vm129_vm5, %v489_v14  ;;  %v730_v27 = vmul.f32 %v3284_v45, %v719_v11  ;;  %v2385_v14 = vld [vmem:[%s3265_s2 + $0x18] sm:$0xf]  ;;  %v3276_v23 = vperm.slane %v2776_v4, 3 }
  0xb1   :  { %2360 = vmatmul.msk.f32.vlgmr.msrb.gmra.mxu0 %vm125_vm6, %v2358_v2  ;;  %2362 = vmatmul.msk.f32.vlgmr.msrb.gmra.mxu1 %vm125_vm6, %v2358_v2 }
  0xb2   :  { %2368 = vmatpush.msk.msra.mxu0 %vm129_vm5, %v2580_v18  ;;  %2370 = vmatpush.msk.msra.mxu1 %vm129_vm5, %v2582_v19  ;;  %v3278_v18 = vperm.slane %v2792_v22, 3 }
  0xb3   :  { %2373 = vmatmul.msk.f32.vlgmr.msra.gmra.mxu2 %vm125_vm6, %v2367_v25  ;;  %2375 = vmatmul.msk.f32.vlgmr.msra.gmra.mxu3 %vm125_vm6, %v2367_v25 }
  0xb4   :  { %2377 = vmatpush.msk.msrb.mxu0 %vm129_vm5, %v730_v27  ;;  %v715_v32 = vpop.permute.xlu0 %714  ;;  %2379 = vmatpush.msk.msrb.mxu1 %vm129_vm5, %v731_v24  ;;  %v2394_v27 = vld [vmem:[%s3265_s2 + $0x1c] sm:$0xf] }
  0xb5   :  { %v717_v19 = vsel %vm716_vm10, %v2729_v38, %v715_v32  ;;  %v720_v33 = vsel %vm716_vm10, %v715_v32, %v709_v61  ;;  %v2376_v38 = vld [vmem:[%s3265_s2 + $0x14] sm:$0xf]  ;;  %v2513_v61 = vmov 0   ;;  %v3274_v32 = vperm.slane %v2776_v4, 0 }
  0xb6   :  { %v732_v36 = vmul.f32 %v3282_v28, %v717_v19  ;;  %v733_v39 = vmul.f32 %v3287_v29, %v720_v33  ;;  %v853_v40 = vpop.permute.xlu1 %852  ;;  %2502 = vset.pattern.permute.xlu2 %v2513_v61  ;;  %2503 = vset.pattern.permute.xlu0 %v2513_v61  ;;  %v3273_v19 = vperm.slane %v2776_v4, 1 }
  0xb7   :  { %v858_v44 = vsel %vm854_vm11, %v853_v40, %v847_v63  ;;  %1252 = vperm.xlu2 %2502, %v1249_v43  }
  0xb8   :  { %v871_v48 = vmul.f32 %v3278_v18, %v858_v44  ;;  %2381 = vmatpush.msk.msrb.mxu2 %vm129_vm5, %v732_v36  ;;  %2383 = vmatpush.msk.msrb.mxu3 %vm129_vm5, %v733_v39  ;;  %v3272_v36 = vperm.slane %v2891_v31, 0  ;;  %v3271_v39 = vperm.slane %v2891_v31, 1 }
  0xb9   :  { %2369 = vmatmul.msk.f32.vlgmr.msra.gmra.mxu0 %vm125_vm6, %v2367_v25  ;;  %2371 = vmatmul.msk.f32.vlgmr.msra.gmra.mxu1 %vm125_vm6, %v2367_v25 }
  0xba   :  { %2386 = vmatpush.msk.msra.mxu0 %vm129_vm5, %v868_v42  ;;  %2392 = vmatpush.msk.msra.mxu3 %vm129_vm5, %v871_v48 }
  0xbb   :  { %2382 = vmatmul.msk.f32.vlgmr.msrb.gmra.mxu2 %vm125_vm6, %v2376_v38  ;;  %2384 = vmatmul.msk.f32.vlgmr.msrb.gmra.mxu3 %vm125_vm6, %v2376_v38 }
  0xbc   :  { %v851_v58 = vpop.permute.xlu0 %850 }
  0xbd   :  { %v855_v63 = vsel %vm854_vm11, %v851_v58, %v853_v40  ;;  %v856_v2 = vsel %vm854_vm11, %v849_v26, %v851_v58  ;;  %v1127_v40 = vpop.permute.xlu2 %1126 }
  0xbe   :  { %v870_v5 = vmul.f32 %v3279_v50, %v855_v63  ;;  %v989_v6 = vpop.permute.xlu1 %988  ;;  %v869_v12 = vmul.f32 %v3280_v52, %v856_v2  ;;  %v3270_v2 = vperm.slane %v2891_v31, 2 }
  0xbf   :  { %v993_v20 = vsel %vm992_vm12, %v989_v6, %v991_v60 }
  0xc0   :  { %2388 = vmatpush.msk.msra.mxu1 %vm129_vm5, %v869_v12  ;;  %2390 = vmatpush.msk.msra.mxu2 %vm129_vm5, %v870_v5  ;;  %v1008_v17 = vmul.f32 %v3277_v59, %v993_v20  ;;  %v3275_v5 = vperm.slane %v2891_v31, 3 }
  0xc1   :  { %2378 = vmatmul.msk.f32.vlgmr.msrb.gmra.mxu0 %vm125_vm6, %v2376_v38  ;;  %2380 = vmatmul.msk.f32.vlgmr.msrb.gmra.mxu1 %vm125_vm6, %v2376_v38 }
  0xc2   :  { %2399 = vmatpush.msk.msrb.mxu2 %vm129_vm5, %v1008_v17 }
  0xc3   :  { %2391 = vmatmul.msk.f32.vlgmr.msra.gmra.mxu2 %vm125_vm6, %v2385_v14  ;;  %2393 = vmatmul.msk.f32.vlgmr.msra.gmra.mxu3 %vm125_vm6, %v2385_v14 }
  0xc4   :  { %v985_v11 = vpop.permute.xlu0 %984 }
  0xc5   :  { %v996_v24 = vsel %vm992_vm12, %v991_v60, %v985_v11 }
  0xc6   :  { %v1009_v25 = vmul.f32 %v3276_v23, %v996_v24  ;;  %v1123_v26 = vpop.permute.xlu1 %1122 }
  0xc8   :  { %2401 = vmatpush.msk.msrb.mxu3 %vm129_vm5, %v1009_v25 }
  0xc9   :  { %2387 = vmatmul.msk.f32.vlgmr.msra.gmra.mxu0 %vm125_vm6, %v2385_v14  ;;  %2389 = vmatmul.msk.f32.vlgmr.msra.gmra.mxu1 %vm125_vm6, %v2385_v14 }
  0xcb   :  { %2400 = vmatmul.msk.f32.vlgmr.msrb.gmra.mxu2 %vm125_vm6, %v2394_v27  ;;  %2402 = vmatmul.msk.f32.vlgmr.msrb.gmra.mxu3 %vm125_vm6, %v2394_v27 }
  0xcc   :  { %v987_v33 = vpop.permute.xlu0 %986 }
  0xcd   :  { %v994_v42 = vsel %vm992_vm12, %v987_v33, %v989_v6  ;;  %v995_v44 = vsel %vm992_vm12, %v985_v11, %v987_v33  ;;  %v2403_v11 = vld [vmem:[%s3265_s2 + $0x20] sm:$0xf] }
  0xce   :  { %v1006_v48 = vmul.f32 %v3274_v32, %v995_v44  ;;  %v1007_v38 = vmul.f32 %v3273_v19, %v994_v42  ;;  %v1125_v43 = vpop.permute.xlu1 %1124 }
  0xcf   :  { %v1133_v58 = vsel %vm1130_vm13, %v1123_v26, %v1125_v43  ;;  %v1132_v60 = vsel %vm1130_vm13, %v1125_v43, %v1127_v40 }
  0xd0   :  { %v1144_v61 = vmul.f32 %v3272_v36, %v1133_v58  ;;  %2395 = vmatpush.msk.msrb.mxu0 %vm129_vm5, %v1006_v48  ;;  %2397 = vmatpush.msk.msrb.mxu1 %vm129_vm5, %v1007_v38  ;;  %v1145_v63 = vmul.f32 %v3271_v39, %v1132_v60 }
  0xd1   :  { %2396 = vmatmul.msk.f32.vlgmr.msrb.gmra.mxu0 %vm125_vm6, %v2394_v27  ;;  %2398 = vmatmul.msk.f32.vlgmr.msrb.gmra.mxu1 %vm125_vm6, %v2394_v27 }
  0xd2   :  { %2404 = vmatpush.msk.msra.mxu0 %vm129_vm5, %v1144_v61  ;;  %2406 = vmatpush.msk.msra.mxu1 %vm129_vm5, %v1145_v63 }
  0xd4   :  { %v1129_v6 = vpop.permute.xlu0 %1128 }
  0xd5   :  { %v1131_v12 = vsel %vm1130_vm13, %v1127_v40, %v1129_v6  ;;  %v1134_v20 = vsel %vm1130_vm13, %v1129_v6, %v1123_v26 }
  0xd6   :  { %v1146_v14 = vmul.f32 %v3270_v2, %v1131_v12  ;;  %v1147_v17 = vmul.f32 %v3275_v5, %v1134_v20 }
  0xd8   :  { %2408 = vmatpush.msk.msra.mxu2 %vm129_vm5, %v1146_v14  ;;  %2410 = vmatpush.msk.msra.mxu3 %vm129_vm5, %v1147_v17 }
  0xd9   :  { %2405 = vmatmul.msk.f32.vlgmr.msra.gmra.mxu0 %vm125_vm6, %v2403_v11  ;;  %2407 = vmatmul.msk.f32.vlgmr.msra.gmra.mxu1 %vm125_vm6, %v2403_v11 }
  0xda   :  { %2409 = vmatmul.msk.f32.vlgmr.msra.gmra.mxu2 %vm125_vm6, %v2403_v11  ;;  %2411 = vmatmul.msk.f32.vlgmr.msra.gmra.mxu3 %vm125_vm6, %v2403_v11 }
 0x114   :  { %v199_v24 = vpop.f32.mrf.mxu2  ;;  %v219_v25 = vpop.f32.mrf.mxu3 }
 0x116   :  { %v159_v26 = vpop.f32.mrf.mxu0  ;;  %v179_v27 = vpop.f32.mrf.mxu1 }
 0x11e   :  { %v294_v33 = vpop.f32.mrf.mxu2  ;;  %v314_v40 = vpop.f32.mrf.mxu3 }
 0x11f   :  { %v254_v42 = vpop.f32.mrf.mxu0  ;;  %v274_v44 = vpop.f32.mrf.mxu1  ;;  %v315_v30 = vadd.f32 %v314_v40, %v219_v25  ;;  %v295_v45 = vadd.f32 %v294_v33, %v199_v24 }
 0x120   :  { %v275_v5 = vadd.f32 %v274_v44, %v179_v27  ;;  %v255_v23 = vadd.f32 %v254_v42, %v159_v26 }
 0x126   :  { %v428_v48 = vpop.f32.mrf.mxu2  ;;  %v448_v38 = vpop.f32.mrf.mxu3 }
 0x127   :  { %v388_v43 = vpop.f32.mrf.mxu0  ;;  %v408_v58 = vpop.f32.mrf.mxu1  ;;  %v453_v56 = vadd.f32 %v428_v48, %v295_v45  ;;  %v454_v35 = vadd.f32 %v448_v38, %v315_v30 }
 0x128   :  { %v451_v50 = vadd.f32 %v388_v43, %v255_v23  ;;  %v452_v52 = vadd.f32 %v408_v58, %v275_v5  ;;  %v2299_v43 = vld [vmem:[%s3267_s5] sm:$0xf] }
 0x12e   :  { %v566_v60 = vpop.f32.mrf.mxu2  ;;  %v586_v61 = vpop.f32.mrf.mxu3 }
 0x12f   :  { %v526_v63 = vpop.f32.mrf.mxu0  ;;  %v546_v6 = vpop.f32.mrf.mxu1  ;;  %v591_v16 = vadd.f32 %v566_v60, %v453_v56  ;;  %v592_v57 = vadd.f32 %v586_v61, %v454_v35 }
 0x130   :  { %v589_v28 = vadd.f32 %v526_v63, %v451_v50  ;;  %v590_v41 = vadd.f32 %v546_v6, %v452_v52  ;;  %v1253_v52 = vpop.permute.xlu2 %1252 }
 0x136   :  { %v670_v12 = vpop.f32.mrf.mxu2  ;;  %v690_v20 = vpop.f32.mrf.mxu3 }
 0x137   :  { %v630_v14 = vpop.f32.mrf.mxu0  ;;  %v650_v17 = vpop.f32.mrf.mxu1  ;;  %v695_v42 = vadd.f32 %v670_v12, %v591_v16  ;;  %v696_v44 = vadd.f32 %v690_v20, %v592_v57 }
 0x138   :  { %v693_v29 = vadd.f32 %v630_v14, %v589_v28  ;;  %v694_v37 = vadd.f32 %v650_v17, %v590_v41  ;;  %v2412_v14 = vld [vmem:[%s3268_s4 + $0x4] sm:$0xf] }
 0x13e   :  { %v808_v39 = vpop.f32.mrf.mxu2  ;;  %v828_v36 = vpop.f32.mrf.mxu3 }
 0x13f   :  { %v768_v11 = vpop.f32.mrf.mxu0  ;;  %v788_v2 = vpop.f32.mrf.mxu1  ;;  %v833_v24 = vadd.f32 %v808_v39, %v695_v42  ;;  %v834_v33 = vadd.f32 %v828_v36, %v696_v44 }
 0x140   :  { %v831_v15 = vadd.f32 %v768_v11, %v693_v29  ;;  %v832_v34 = vadd.f32 %v788_v2, %v694_v37 }
 0x146   :  { %v946_v59 = vpop.f32.mrf.mxu2  ;;  %v966_v18 = vpop.f32.mrf.mxu3 }
 0x147   :  { %v906_v19 = vpop.f32.mrf.mxu0  ;;  %v926_v32 = vpop.f32.mrf.mxu1  ;;  %v971_v30 = vadd.f32 %v946_v59, %v833_v24  ;;  %v972_v29 = vadd.f32 %v966_v18, %v834_v33 }
 0x148   :  { %v969_v27 = vadd.f32 %v906_v19, %v831_v15  ;;  %v970_v26 = vadd.f32 %v926_v32, %v832_v34 }
 0x14e   :  { %v1084_v23 = vpop.f32.mrf.mxu2  ;;  %v1104_v5 = vpop.f32.mrf.mxu3 }
 0x14f   :  { %v1044_v3 = vpop.f32.mrf.mxu0  ;;  %v1064_v21 = vpop.f32.mrf.mxu1  ;;  %v1109_v35 = vadd.f32 %v1084_v23, %v971_v30  ;;  %v1110_v15 = vadd.f32 %v1104_v5, %v972_v29  ;;  %v3296_v30 = vperm.slane %v2672_v7, 1 }
 0x150   :  { %v1107_v25 = vadd.f32 %v1044_v3, %v969_v27  ;;  %v1108_v50 = vadd.f32 %v1064_v21, %v970_v26 }
 0x157   :  { %v1182_v40 = vpop.f32.mrf.mxu0  ;;  %v1202_v28 = vpop.f32.mrf.mxu1 }
 0x158   :  { %v1245_v41 = vadd.f32 %v1182_v40, %v1107_v25  ;;  %v1246_v45 = vadd.f32 %v1202_v28, %v1108_v50  ;;  %v3295_v40 = vperm.slane %v2638_v51, 2 }
 0x15a   :  { %v1255_v37 = vadd.f32 %v1253_v52, %v1245_v41  ;;  %v1256_v56 = vadd.f32 %v1253_v52, %v1246_v45  ;;  %v1287_v41 = vld [vmem:[%s3268_s4] sm:$0xf] }
 0x15c   :  { %vm1259_vm14 = vcmp.gt.f32.partialorder %v1255_v37, 0.0  ;;  %vm1260_vm15 = vcmp.gt.f32.partialorder %v1256_v56, 0.0  ;;  %v1263_v57 = vmul.f32 0.01, %v1255_v37  ;;  %v1264_v16 = vmul.f32 0.01, %v1256_v56 }
 0x15d   :  { %v1222_v34 = vpop.f32.mrf.mxu2  ;;  %v1242_v3 = vpop.f32.mrf.mxu3 }
 0x15e   :  { %v2943_v21 = vsel %vm1259_vm14, %v1255_v37, %v1263_v57  ;;  %v2945_v32 = vsel %vm1260_vm15, %v1256_v56, %v1264_v16  ;;  %v1247_v19 = vadd.f32 %v1222_v34, %v1109_v35  ;;  %v1248_v36 = vadd.f32 %v1242_v3, %v1110_v15 }
 0x15f   :  { %1290 = vrot.lane.b32.xlu2 %v2945_v32, %s2505_s0  ;;  %1271 = vrot.lane.b32.xlu1 %v2943_v21, %s2504_s25  ;;  %v3297_v37 = vperm.slane %v2672_v7, 2  ;;  %v3298_v16 = vperm.slane %v2672_v7, 0  ;;  %v3299_v3 = vperm.slane %v2672_v7, 3 }
 0x160   :  { %v1257_v18 = vadd.f32 %v1253_v52, %v1247_v19  ;;  %v1258_v59 = vadd.f32 %v1253_v52, %v1248_v36  ;;  %1288 = vrot.lane.b32.xlu0 %v2943_v21, %s2505_s0  ;;  %v2429_v36 = vld [vmem:[%s3268_s4 + $0x8] sm:$0xf] }
 0x162   :  { %v1266_v39 = vmul.f32 0.01, %v1258_v59  ;;  %v1265_v2 = vmul.f32 0.01, %v1257_v18  ;;  %vm1262_vm0 = vcmp.gt.f32.partialorder %v1258_v59, 0.0  ;;  %vm1261_vm1 = vcmp.gt.f32.partialorder %v1257_v18, 0.0 }
 0x164   :  { %v2953_v48 = vsel %vm1262_vm0, %v1258_v59, %v1266_v39  ;;  %v2955_v38 = vsel %vm1261_vm1, %v1257_v18, %v1265_v2  ;;  %v3300_v2 = vperm.slane %v2632_v47, 2 }
 0x167   :  { %1496 = vrot.lane.b32.xlu2 %v2943_v21, %s2506_s26  ;;  %1294 = vrot.lane.b32.xlu1 %v2953_v48, %s2505_s0 }
 0x168   :  { %1292 = vrot.lane.b32.xlu0 %v2955_v38, %s2505_s0 }
 0x16f   :  { %1277 = vrot.lane.b32.xlu2 %v2953_v48, %s2504_s25  ;;  %1275 = vrot.lane.b32.xlu1 %v2955_v38, %s2504_s25 }
 0x170   :  { %1273 = vrot.lane.b32.xlu0 %v2945_v32, %s2504_s25 }
 0x177   :  { %1500 = vrot.lane.b32.xlu2 %v2955_v38, %s2506_s26  ;;  %1498 = vrot.lane.b32.xlu1 %v2945_v32, %s2506_s26 }
 0x178   :  { %1502 = vrot.lane.b32.xlu0 %v2953_v48, %s2506_s26 }
 0x17f   :  { %1615 = vrot.lane.b32.xlu2 %v2945_v32, %s2507_s27  ;;  %1619 = vrot.lane.b32.xlu1 %v2953_v48, %s2507_s27 }
 0x180   :  { %1617 = vrot.lane.b32.xlu0 %v2955_v38, %s2507_s27 }
 0x187   :  { %1948 = vrot.lane.b32.xlu2 %v2943_v21, %s2509_s29  ;;  %1831 = vrot.lane.b32.xlu1 %v2943_v21, %s2508_s28 }
 0x188   :  { %1613 = vrot.lane.b32.xlu0 %v2943_v21, %s2507_s27 }
 0x18f   :  { %1837 = vrot.lane.b32.xlu2 %v2953_v48, %s2508_s28  ;;  %1833 = vrot.lane.b32.xlu1 %v2945_v32, %s2508_s28 }
 0x190   :  { %1835 = vrot.lane.b32.xlu0 %v2955_v38, %s2508_s28 }
 0x197   :  { %1950 = vrot.lane.b32.xlu2 %v2945_v32, %s2509_s29  ;;  %1952 = vrot.lane.b32.xlu1 %v2955_v38, %s2509_s29 }
 0x198   :  { %1954 = vrot.lane.b32.xlu0 %v2953_v48, %s2509_s29 }
 0x19f   :  { %2069 = vrot.lane.b32.xlu2 %v2955_v38, %s2510_s30  ;;  %2071 = vrot.lane.b32.xlu1 %v2953_v48, %s2510_s30 }
 0x1a0   :  { %2065 = vrot.lane.b32.xlu0 %v2943_v21, %s2510_s30 }
 0x1a7   :  { %2188 = vrot.lane.b32.xlu2 %v2953_v48, %s2511_s7  ;;  %2182 = vrot.lane.b32.xlu1 %v2943_v21, %s2511_s7 }
 0x1a8   :  { %2067 = vrot.lane.b32.xlu0 %v2945_v32, %s2510_s30 }
 0x1af   :  { %2302 = vperm.xlu2 %2502, %v2299_v43   ;;  %2184 = vrot.lane.b32.xlu1 %v2945_v32, %s2511_s7 }
 0x1b0   :  { %2186 = vrot.lane.b32.xlu0 %v2955_v38, %s2511_s7 }
 0x1b9   :  { %v1291_v58 = vpop.permute.xlu2 %1290 }
 0x1c1   :  { %v1497_v60 = vpop.permute.xlu2 %1496 }
 0x1c9   :  { %v1278_v61 = vpop.permute.xlu2 %1277 }
 0x1d1   :  { %v1272_v63 = vpop.permute.xlu1 %1271  ;;  %v1501_v17 = vpop.permute.xlu2 %1500 }
 0x1d2   :  { %v1289_v6 = vpop.permute.xlu0 %1288  ;;  %v1282_v42 = vsel %vm67_vm2, %v1278_v61, %v1272_v63 }
 0x1d3   :  { %v1298_v12 = vsel %vm105_vm3, %v1289_v6, %v1291_v58  ;;  %v1283_v50 = vmul.f32 %v1282_v42, %v73_v8  ;;  %v3304_v42 = vperm.slane %v2632_v47, 1 }
 0x1d4   :  { %v1301_v20 = vmul.f32 %v1298_v12, %v112_v10 }
 0x1d6   :  { %2415 = vmatpush.msk.msrb.mxu1 %vm129_vm5, %v1301_v20 }
 0x1d7   :  { %2416 = vmatmul.msk.f32.vlgmr.msrb.gmra.mxu1 %vm125_vm6, %v2412_v14 }
 0x1d9   :  { %v1295_v11 = vpop.permute.xlu1 %1294  ;;  %v1616_v46 = vpop.permute.xlu2 %1615 }
 0x1da   :  { %v1299_v27 = vsel %vm105_vm3, %v1295_v11, %v1289_v6  ;;  %v1293_v26 = vpop.permute.xlu0 %1292 }
 0x1db   :  { %v1300_v10 = vmul.f32 %v1299_v27, %v111_v9  ;;  %v1296_v44 = vsel %vm105_vm3, %v1293_v26, %v1295_v11  ;;  %v1297_v23 = vsel %vm105_vm3, %v1291_v58, %v1293_v26  ;;  %v3301_v58 = vperm.slane %v2632_v47, 3 }
 0x1dc   :  { %v1302_v5 = vmul.f32 %v1297_v23, %v113_v54  ;;  %v1303_v25 = vmul.f32 %v1296_v44, %v114_v55  ;;  %v3303_v26 = vperm.slane %v2632_v47, 0 }
 0x1dd   :  { %2413 = vmatpush.msk.msrb.mxu0 %vm129_vm5, %v1300_v10  ;;  %v2447_v10 = vld [vmem:[%s3268_s4 + $0x10] sm:$0xf] }
 0x1de   :  { %2417 = vmatpush.msk.msrb.mxu2 %vm129_vm5, %v1302_v5  ;;  %2419 = vmatpush.msk.msrb.mxu3 %vm129_vm5, %v1303_v25 }
 0x1df   :  { %2418 = vmatmul.msk.f32.vlgmr.msrb.gmra.mxu2 %vm125_vm6, %v2412_v14  ;;  %2420 = vmatmul.msk.f32.vlgmr.msrb.gmra.mxu3 %vm125_vm6, %v2412_v14 }
 0x1e0   :  { %2421 = vmatpush.msk.msra.mxu0 %vm129_vm5, %v1283_v50  ;;  %v3305_v50 = vperm.slane %v2655_v62, 0 }
 0x1e1   :  { %v1276_v9 = vpop.permute.xlu1 %1275  ;;  %2414 = vmatmul.msk.f32.vlgmr.msrb.gmra.mxu0 %vm125_vm6, %v2412_v14  ;;  %v3084_v57 = vpop.permute.xlu2 %1948  ;;  %v3302_v14 = vperm.slane %v2655_v62, 3 }
 0x1e2   :  { %v1279_v54 = vsel %vm67_vm2, %v1276_v9, %v1278_v61  ;;  %v1274_v55 = vpop.permute.xlu0 %1273  ;;  %v2438_v61 = vld [vmem:[%s3268_s4 + $0xc] sm:$0xf] }
 0x1e3   :  { %v1286_v8 = vmul.f32 %v1279_v54, %v76_v53  ;;  %v1280_v52 = vsel %vm67_vm2, %v1274_v55, %v1276_v9  ;;  %v1281_v24 = vsel %vm67_vm2, %v1272_v63, %v1274_v55  ;;  %v3307_v55 = vperm.slane %v2655_v62, 2 }
 0x1e4   :  { %v1284_v33 = vmul.f32 %v1281_v24, %v74_v13  ;;  %v1285_v28 = vmul.f32 %v1280_v52, %v3295_v40  ;;  %v3308_v52 = vperm.slane %v2792_v22, 0 }
 0x1e5   :  { %2427 = vmatpush.msk.msra.mxu3 %vm129_vm5, %v1286_v8 }
 0x1e6   :  { %2423 = vmatpush.msk.msra.mxu1 %vm129_vm5, %v1284_v33  ;;  %2425 = vmatpush.msk.msra.mxu2 %vm129_vm5, %v1285_v28  ;;  %v2456_v33 = vld [vmem:[%s3268_s4 + $0x14] sm:$0xf] }
 0x1e7   :  { %2426 = vmatmul.msk.f32.vlgmr.msra.gmra.mxu2 %vm125_vm6, %v1287_v41  ;;  %2428 = vmatmul.msk.f32.vlgmr.msra.gmra.mxu3 %vm125_vm6, %v1287_v41 }
 0x1e8   :  { %2424 = vmatmul.msk.f32.vlgmr.msra.gmra.mxu1 %vm125_vm6, %v1287_v41 }
 0x1e9   :  { %v1499_v53 = vpop.permute.xlu1 %1498  ;;  %2422 = vmatmul.msk.f32.vlgmr.msra.gmra.mxu0 %vm125_vm6, %v1287_v41  ;;  %v1838_v63 = vpop.permute.xlu2 %1837  ;;  %v3309_v41 = vperm.slane %v2792_v22, 1 }
 0x1ea   :  { %v1505_v51 = vsel %vm336_vm7, %v1499_v53, %v1501_v17  ;;  %v1506_v13 = vsel %vm336_vm7, %v1497_v60, %v1499_v53  ;;  %v1503_v45 = vpop.permute.xlu0 %1502 }
 0x1eb   :  { %v1509_v29 = vmul.f32 %v1506_v13, %v3296_v30  ;;  %v1510_v56 = vmul.f32 %v1505_v51, %v3297_v37  ;;  %v1504_v35 = vsel %vm336_vm7, %v1501_v17, %v1503_v45  ;;  %v1507_v15 = vsel %vm336_vm7, %v1503_v45, %v1497_v60 }
 0x1ec   :  { %v1508_v34 = vmul.f32 %v1507_v15, %v3298_v16  ;;  %v1511_v19 = vmul.f32 %v1504_v35, %v3299_v3  ;;  %v3310_v45 = vperm.slane %v2792_v22, 2  ;;  %v3312_v16 = vperm.slane %v2776_v4, 2 }
 0x1ed   :  { %2432 = vmatpush.msk.msrb.mxu1 %vm129_vm5, %v1509_v29  ;;  %2434 = vmatpush.msk.msrb.mxu2 %vm129_vm5, %v1510_v56  ;;  %v3311_v29 = vperm.slane %v2792_v22, 3  ;;  %v2465_v56 = vld [vmem:[%s3268_s4 + $0x18] sm:$0xf] }
 0x1ee   :  { %2430 = vmatpush.msk.msrb.mxu0 %vm129_vm5, %v1508_v34  ;;  %2436 = vmatpush.msk.msrb.mxu3 %vm129_vm5, %v1511_v19  ;;  %v3313_v19 = vperm.slane %v2776_v4, 3 }
 0x1ef   :  { %2435 = vmatmul.msk.f32.vlgmr.msrb.gmra.mxu2 %vm125_vm6, %v2429_v36  ;;  %2437 = vmatmul.msk.f32.vlgmr.msrb.gmra.mxu3 %vm125_vm6, %v2429_v36 }
 0x1f0   :  { %2433 = vmatmul.msk.f32.vlgmr.msrb.gmra.mxu1 %vm125_vm6, %v2429_v36 }
 0x1f1   :  { %v1620_v7 = vpop.permute.xlu1 %1619  ;;  %2431 = vmatmul.msk.f32.vlgmr.msrb.gmra.mxu0 %vm125_vm6, %v2429_v36  ;;  %v1951_v44 = vpop.permute.xlu2 %1950 }
 0x1f2   :  { %v1618_v18 = vpop.permute.xlu0 %1617  ;;  %v1958_v25 = vsel %vm854_vm11, %v3084_v57, %v1951_v44 }
 0x1f3   :  { %v1621_v59 = vsel %vm474_vm8, %v1618_v18, %v1620_v7  ;;  %v1622_v39 = vsel %vm474_vm8, %v1616_v46, %v1618_v18  ;;  %v1960_v24 = vmul.f32 %v1958_v25, %v3308_v52 }
 0x1f4   :  { %v1627_v43 = vmul.f32 %v1622_v39, %v3300_v2  ;;  %v1628_v60 = vmul.f32 %v1621_v59, %v3301_v58 }
 0x1f6   :  { %2443 = vmatpush.msk.msra.mxu2 %vm129_vm5, %v1627_v43  ;;  %2445 = vmatpush.msk.msra.mxu3 %vm129_vm5, %v1628_v60  ;;  %v3314_v43 = vperm.slane %v2891_v31, 3 }
 0x1f7   :  { %2444 = vmatmul.msk.f32.vlgmr.msra.gmra.mxu2 %vm125_vm6, %v2438_v61  ;;  %2446 = vmatmul.msk.f32.vlgmr.msra.gmra.mxu3 %vm125_vm6, %v2438_v61 }
 0x1f8   :  { %2452 = vmatpush.msk.msrb.mxu2 %vm129_vm5, %v2955_v38  ;;  %2454 = vmatpush.msk.msrb.mxu3 %vm129_vm5, %v2953_v48 }
 0x1f9   :  { %v1832_v6 = vpop.permute.xlu1 %1831  ;;  %v2070_v35 = vpop.permute.xlu2 %2069 }
 0x1fa   :  { %v1842_v12 = vsel %vm716_vm10, %v1838_v63, %v1832_v6  ;;  %v1614_v20 = vpop.permute.xlu0 %1613 }
 0x1fb   :  { %v1846_v17 = vmul.f32 %v1842_v12, %v3302_v14  ;;  %v1623_v11 = vsel %vm474_vm8, %v1614_v20, %v1616_v46  ;;  %v1624_v27 = vsel %vm474_vm8, %v1620_v7, %v1614_v20  ;;  %v3306_v46 = vperm.slane %v2655_v62, 1  ;;  %v2474_v7 = vld [vmem:[%s3268_s4 + $0x1c] sm:$0xf]  ;;  %v2483_v14 = vld [vmem:[%s3268_s4 + $0x20] sm:$0xf] }
 0x1fc   :  { %v1625_v38 = vmul.f32 %v1624_v27, %v3303_v26  ;;  %v1626_v48 = vmul.f32 %v1623_v11, %v3304_v42  ;;  %v3316_v12 = vperm.slane %v2776_v4, 1  ;;  %v3317_v27 = vperm.slane %v2891_v31, 0 }
 0x1fd   :  { %2463 = vmatpush.msk.msra.mxu3 %vm129_vm5, %v1846_v17 }
 0x1fe   :  { %2439 = vmatpush.msk.msra.mxu0 %vm129_vm5, %v1625_v38  ;;  %2441 = vmatpush.msk.msra.mxu1 %vm129_vm5, %v1626_v48  ;;  %v3318_v48 = vperm.slane %v2891_v31, 1 }
 0x1ff   :  { %2440 = vmatmul.msk.f32.vlgmr.msra.gmra.mxu0 %vm125_vm6, %v2438_v61  ;;  %2442 = vmatmul.msk.f32.vlgmr.msra.gmra.mxu1 %vm125_vm6, %v2438_v61 }
 0x200   :  { %2448 = vmatpush.msk.msrb.mxu0 %vm129_vm5, %v2943_v21  ;;  %2450 = vmatpush.msk.msrb.mxu1 %vm129_vm5, %v2945_v32 }
 0x201   :  { %2453 = vmatmul.msk.f32.vlgmr.msrb.gmra.mxu2 %vm125_vm6, %v2447_v10  ;;  %2455 = vmatmul.msk.f32.vlgmr.msrb.gmra.mxu3 %vm125_vm6, %v2447_v10  ;;  %v1834_v47 = vpop.permute.xlu1 %1833  ;;  %v2189_v18 = vpop.permute.xlu2 %2188 }
 0x202   :  { %v1841_v23 = vsel %vm716_vm10, %v1832_v6, %v1834_v47  ;;  %v1836_v5 = vpop.permute.xlu0 %1835 }
 0x203   :  { %v1843_v9 = vmul.f32 %v1841_v23, %v3305_v50  ;;  %v1839_v21 = vsel %vm716_vm10, %v1836_v5, %v1838_v63  ;;  %v1840_v32 = vsel %vm716_vm10, %v1834_v47, %v1836_v5  ;;  %v3315_v63 = vperm.slane %v2776_v4, 0 }
 0x204   :  { %v1844_v54 = vmul.f32 %v1840_v32, %v3306_v46  ;;  %v1845_v8 = vmul.f32 %v1839_v21, %v3307_v55 }
 0x205   :  { %2457 = vmatpush.msk.msra.mxu0 %vm129_vm5, %v1843_v9 }
 0x206   :  { %2459 = vmatpush.msk.msra.mxu1 %vm129_vm5, %v1844_v54  ;;  %2461 = vmatpush.msk.msra.mxu2 %vm129_vm5, %v1845_v8 }
 0x207   :  { %2449 = vmatmul.msk.f32.vlgmr.msrb.gmra.mxu0 %vm125_vm6, %v2447_v10  ;;  %2451 = vmatmul.msk.f32.vlgmr.msrb.gmra.mxu1 %vm125_vm6, %v2447_v10 }
 0x208   :  { %2466 = vmatpush.msk.msrb.mxu0 %vm129_vm5, %v1960_v24 }
 0x209   :  { %2462 = vmatmul.msk.f32.vlgmr.msra.gmra.mxu2 %vm125_vm6, %v2456_v33  ;;  %2464 = vmatmul.msk.f32.vlgmr.msra.gmra.mxu3 %vm125_vm6, %v2456_v33  ;;  %v1953_v62 = vpop.permute.xlu1 %1952 }
 0x20a   :  { %v1957_v40 = vsel %vm854_vm11, %v1951_v44, %v1953_v62  ;;  %v1955_v28 = vpop.permute.xlu0 %1954  ;;  %v3319_v44 = vperm.slane %v2891_v31, 2 }
 0x20b   :  { %v1961_v53 = vmul.f32 %v1957_v40, %v3309_v41  ;;  %v1956_v51 = vsel %vm854_vm11, %v1953_v62, %v1955_v28  ;;  %v1959_v13 = vsel %vm854_vm11, %v1955_v28, %v3084_v57 }
 0x20c   :  { %v1962_v30 = vmul.f32 %v1956_v51, %v3310_v45  ;;  %v1963_v37 = vmul.f32 %v1959_v13, %v3311_v29 }
 0x20d   :  { %2468 = vmatpush.msk.msrb.mxu1 %vm129_vm5, %v1961_v53 }
 0x20e   :  { %2470 = vmatpush.msk.msrb.mxu2 %vm129_vm5, %v1962_v30  ;;  %2472 = vmatpush.msk.msrb.mxu3 %vm129_vm5, %v1963_v37 }
 0x20f   :  { %2458 = vmatmul.msk.f32.vlgmr.msra.gmra.mxu0 %vm125_vm6, %v2456_v33  ;;  %2460 = vmatmul.msk.f32.vlgmr.msra.gmra.mxu1 %vm125_vm6, %v2456_v33 }
 0x211   :  { %2471 = vmatmul.msk.f32.vlgmr.msrb.gmra.mxu2 %vm125_vm6, %v2465_v56  ;;  %2473 = vmatmul.msk.f32.vlgmr.msrb.gmra.mxu3 %vm125_vm6, %v2465_v56  ;;  %v2072_v22 = vpop.permute.xlu1 %2071 }
 0x212   :  { %v2073_v15 = vsel %vm992_vm12, %v2070_v35, %v2072_v22  ;;  %v2066_v57 = vpop.permute.xlu0 %2065 }
 0x213   :  { %v2079_v34 = vmul.f32 %v2073_v15, %v3312_v16  ;;  %v2076_v3 = vsel %vm992_vm12, %v2072_v22, %v2066_v57 }
 0x214   :  { %v2080_v36 = vmul.f32 %v2076_v3, %v3313_v19 }
 0x215   :  { %2479 = vmatpush.msk.msra.mxu2 %vm129_vm5, %v2079_v34 }
 0x216   :  { %2481 = vmatpush.msk.msra.mxu3 %vm129_vm5, %v2080_v36 }
 0x217   :  { %2467 = vmatmul.msk.f32.vlgmr.msrb.gmra.mxu0 %vm125_vm6, %v2465_v56  ;;  %2469 = vmatmul.msk.f32.vlgmr.msrb.gmra.mxu1 %vm125_vm6, %v2465_v56 }
 0x219   :  { %2480 = vmatmul.msk.f32.vlgmr.msra.gmra.mxu2 %vm125_vm6, %v2474_v7  ;;  %2482 = vmatmul.msk.f32.vlgmr.msra.gmra.mxu3 %vm125_vm6, %v2474_v7  ;;  %v2183_v59 = vpop.permute.xlu1 %2182 }
 0x21a   :  { %v2193_v39 = vsel %vm1130_vm13, %v2189_v18, %v2183_v59  ;;  %v2068_v2 = vpop.permute.xlu0 %2067 }
 0x21b   :  { %v2197_v58 = vmul.f32 %v2193_v39, %v3314_v43  ;;  %v2074_v60 = vsel %vm992_vm12, %v2068_v2, %v2070_v35  ;;  %v2075_v61 = vsel %vm992_vm12, %v2066_v57, %v2068_v2 }
 0x21c   :  { %v2077_v6 = vmul.f32 %v2075_v61, %v3315_v63  ;;  %v2078_v20 = vmul.f32 %v2074_v60, %v3316_v12 }
 0x21d   :  { %2490 = vmatpush.msk.msrb.mxu3 %vm129_vm5, %v2197_v58 }
 0x21e   :  { %2475 = vmatpush.msk.msra.mxu0 %vm129_vm5, %v2077_v6  ;;  %2477 = vmatpush.msk.msra.mxu1 %vm129_vm5, %v2078_v20 }
 0x21f   :  { %2476 = vmatmul.msk.f32.vlgmr.msra.gmra.mxu0 %vm125_vm6, %v2474_v7  ;;  %2478 = vmatmul.msk.f32.vlgmr.msra.gmra.mxu1 %vm125_vm6, %v2474_v7 }
 0x221   :  { %2491 = vmatmul.msk.f32.vlgmr.msrb.gmra.mxu3 %vm125_vm6, %v2483_v14  ;;  %v2185_v17 = vpop.permute.xlu1 %2184 }
 0x222   :  { %v2192_v4 = vsel %vm1130_vm13, %v2183_v59, %v2185_v17  ;;  %v2187_v11 = vpop.permute.xlu0 %2186 }
 0x223   :  { %v2194_v26 = vmul.f32 %v2192_v4, %v3317_v27  ;;  %v2190_v38 = vsel %vm1130_vm13, %v2187_v11, %v2189_v18  ;;  %v2191_v42 = vsel %vm1130_vm13, %v2185_v17, %v2187_v11 }
 0x224   :  { %v2195_v10 = vmul.f32 %v2191_v42, %v3318_v48  ;;  %v2196_v47 = vmul.f32 %v2190_v38, %v3319_v44 }
 0x225   :  { %2484 = vmatpush.msk.msrb.mxu0 %vm129_vm5, %v2194_v26 }
 0x226   :  { %2486 = vmatpush.msk.msrb.mxu1 %vm129_vm5, %v2195_v10  ;;  %2488 = vmatpush.msk.msrb.mxu2 %vm129_vm5, %v2196_v47 }
 0x227   :  { %2485 = vmatmul.msk.f32.vlgmr.msrb.gmra.mxu0 %vm125_vm6, %v2483_v14  ;;  %2487 = vmatmul.msk.f32.vlgmr.msrb.gmra.mxu1 %vm125_vm6, %v2483_v14 }
 0x228   :  { %2489 = vmatmul.msk.f32.vlgmr.msrb.gmra.mxu2 %vm125_vm6, %v2483_v14 }
 0x254   :  { %v1358_v49 = vpop.f32.mrf.mxu1 }
 0x25e   :  { %v1338_v23 = vpop.f32.mrf.mxu0 }
 0x262   :  { %v1378_v5 = vpop.f32.mrf.mxu2  ;;  %v1398_v25 = vpop.f32.mrf.mxu3 }
 0x265   :  { %v1453_v50 = vpop.f32.mrf.mxu1 }
 0x266   :  { %v1433_v9 = vpop.f32.mrf.mxu0  ;;  %v1454_v35 = vadd.f32 %v1453_v50, %v1358_v49 }
 0x267   :  { %v1434_v56 = vadd.f32 %v1433_v9, %v1338_v23 }
 0x26a   :  { %v1473_v31 = vpop.f32.mrf.mxu2  ;;  %v1493_v21 = vpop.f32.mrf.mxu3 }
 0x26b   :  { %v1494_v22 = vadd.f32 %v1493_v21, %v1398_v25  ;;  %v1474_v39 = vadd.f32 %v1473_v31, %v1378_v5  ;;  %v2303_v5 = vpop.permute.xlu2 %2302 }
 0x26d   :  { %v1566_v54 = vpop.f32.mrf.mxu1 }
 0x26e   :  { %v1546_v55 = vpop.f32.mrf.mxu0  ;;  %v1610_v57 = vadd.f32 %v1566_v54, %v1454_v35 }
 0x26f   :  { %v1609_v34 = vadd.f32 %v1546_v55, %v1434_v56 }
 0x272   :  { %v1586_v32 = vpop.f32.mrf.mxu2  ;;  %v1606_v46 = vpop.f32.mrf.mxu3 }
 0x273   :  { %v1612_v16 = vadd.f32 %v1606_v46, %v1494_v22  ;;  %v1611_v60 = vadd.f32 %v1586_v32, %v1474_v39 }
 0x27a   :  { %v1703_v8 = vpop.f32.mrf.mxu2  ;;  %v1723_v52 = vpop.f32.mrf.mxu3 }
 0x27b   :  { %v1729_v3 = vadd.f32 %v1723_v52, %v1612_v16  ;;  %v1728_v12 = vadd.f32 %v1703_v8, %v1611_v60 }
 0x27c   :  { %v1663_v24 = vpop.f32.mrf.mxu0  ;;  %v1683_v33 = vpop.f32.mrf.mxu1 }
 0x27d   :  { %v1726_v19 = vadd.f32 %v1663_v24, %v1609_v34  ;;  %v1727_v36 = vadd.f32 %v1683_v33, %v1610_v57 }
 0x284   :  { %v1804_v62 = vpop.f32.mrf.mxu2  ;;  %v1824_v40 = vpop.f32.mrf.mxu3 }
 0x285   :  { %v1764_v28 = vpop.f32.mrf.mxu0  ;;  %v1784_v41 = vpop.f32.mrf.mxu1  ;;  %v1830_v2 = vadd.f32 %v1824_v40, %v1729_v3  ;;  %v1829_v11 = vadd.f32 %v1804_v62, %v1728_v12 }
 0x286   :  { %v1827_v43 = vadd.f32 %v1764_v28, %v1726_v19  ;;  %v1828_v58 = vadd.f32 %v1784_v41, %v1727_v36 }
 0x28c   :  { %v1941_v53 = vpop.f32.mrf.mxu3  ;;  %v1921_v45 = vpop.f32.mrf.mxu2 }
 0x28d   :  { %v1881_v51 = vpop.f32.mrf.mxu0  ;;  %v1901_v13 = vpop.f32.mrf.mxu1  ;;  %v1947_v61 = vadd.f32 %v1941_v53, %v1830_v2  ;;  %v1946_v44 = vadd.f32 %v1921_v45, %v1829_v11 }
 0x28e   :  { %v1944_v63 = vadd.f32 %v1881_v51, %v1827_v43  ;;  %v1945_v6 = vadd.f32 %v1901_v13, %v1828_v58 }
 0x294   :  { %v2058_v30 = vpop.f32.mrf.mxu3  ;;  %v2038_v15 = vpop.f32.mrf.mxu2 }
 0x295   :  { %v1998_v29 = vpop.f32.mrf.mxu0  ;;  %v2018_v37 = vpop.f32.mrf.mxu1  ;;  %v2064_v20 = vadd.f32 %v2058_v30, %v1947_v61  ;;  %v2063_v25 = vadd.f32 %v2038_v15, %v1946_v44 }
 0x296   :  { %v2061_v14 = vadd.f32 %v1998_v29, %v1944_v63  ;;  %v2062_v17 = vadd.f32 %v2018_v37, %v1945_v6 }
 0x29c   :  { %v2175_v7 = vpop.f32.mrf.mxu3  ;;  %v2155_v4 = vpop.f32.mrf.mxu2 }
 0x29d   :  { %v2115_v18 = vpop.f32.mrf.mxu0  ;;  %v2135_v59 = vpop.f32.mrf.mxu1  ;;  %v2181_v27 = vadd.f32 %v2175_v7, %v2064_v20  ;;  %v2180_v9 = vadd.f32 %v2155_v4, %v2063_v25 }
 0x29e   :  { %v2178_v26 = vadd.f32 %v2115_v18, %v2061_v14  ;;  %v2179_v38 = vadd.f32 %v2135_v59, %v2062_v17 }
 0x2a4   :  { %v2292_v42 = vpop.f32.mrf.mxu3 }
 0x2a5   :  { %v2232_v48 = vpop.f32.mrf.mxu0  ;;  %v2252_v10 = vpop.f32.mrf.mxu1  ;;  %v2298_v47 = vadd.f32 %v2292_v42, %v2181_v27 }
 0x2a6   :  { %v2295_v49 = vadd.f32 %v2232_v48, %v2178_v26  ;;  %v2296_v23 = vadd.f32 %v2252_v10, %v2179_v38 }
 0x2a7   :  { %v2308_v31 = vadd.f32 %v2303_v5, %v2298_v47 }
 0x2a8   :  { %v2306_v50 = vadd.f32 %v2303_v5, %v2296_v23  ;;  %v2305_v21 = vadd.f32 %v2303_v5, %v2295_v49 }
 0x2a9   :  { %v2314_v52 = vrot.slane %v2308_v31, 4 }
 0x2aa   :  { %v2313_v32 = vrot.slane %v2306_v50, 4 }
 0x2ab   :  { %v2272_v46 = vpop.f32.mrf.mxu2 }
 0x2ac   :  { %v2315_v54 = vsel %vm129_vm5, %v2305_v21, %v2313_v32  ;;  %v2297_v55 = vadd.f32 %v2272_v46, %v2180_v9 }
 0x2ad   :  { %v2319_v8 = vadd.f32 %v2315_v54, %v2552_v0 }
 0x2ae   :  { %v2307_v24 = vadd.f32 %v2303_v5, %v2297_v55 }
 0x2af   :  { %2321 = vst [vmem:[%s3269_s6] sm:$0xff] %v2319_v8 }
 0x2b0   :  { %v2316_v33 = vsel %vm129_vm5, %v2307_v24, %v2314_v52 }
 0x2b1   :  { %v2320_v62 = vadd.f32 %v2316_v33, %v2557_v1 }
 0x2b3   :  { %2322 = vst [vmem:[%s3269_s6 + $0x8] sm:$0xff] %v2320_v62 }

</bundles_post_ra>
